<compile_context>
chip_gen: v7x
topology: tpu7x:2x2x1
jax: 0.10.0
libtpu: 0.0.40
codegen_flags: <defaults>
</compile_context>

<pallas_src>
import functools

import jax
import jax.numpy as jnp
import numpy as np
from jax.experimental import pallas as pl
from jax.experimental.pallas import tpu as pltpu


def _round_up(v, m):
    return ((v + m - 1) // m) * m


def _dendrite_kernel(cat_ref, x_ref, w1_ref, b1_ref, w2d_ref, b2_ref,
                     out_ref, acc_ref, *, out_dim_p, dpn, act_fun_type):
    k = pl.program_id(1)

    @pl.when(k == 0)
    def _():
        acc_ref[...] = jnp.zeros_like(acc_ref)

    # DendriteInput (sparse linear, mask already folded into weights):
    # bf16 x bf16 -> f32 accumulate on the MXU, f32 accumulator in VMEM scratch.
    acc_ref[...] += jnp.dot(x_ref[...], w1_ref[...],
                            preferred_element_type=jnp.float32)

    @pl.when(k == pl.num_programs(1) - 1)
    def _():
        cat = cat_ref[0, 0]                                  # scalar cat_projection
        d = (acc_ref[...] + b1_ref[...]) * cat               # (bt, n_dend_p), f32
        w2d = w2d_ref[...]                                   # (dpn, out_dim_p)

        # Dendrite-major layout: chunk r holds the r-th dendrite of every unit
        # at lane `unit`. out_dim_p is a multiple of 128 -> slices are free.
        chunks = [d[:, r * out_dim_p:(r + 1) * out_dim_p] for r in range(dpn)]

        if act_fun_type == "kwinner":
            # DendriteKWinners2dLocal with k=1: keep only the strongest dendrite
            # per unit (first dendrite wins ties), fused with the block-diagonal
            # DendriteOutput as dpn per-lane FMAs.
            mx = chunks[0]
            for c in chunks[1:]:
                mx = jnp.maximum(mx, c)
            acc_out = None
            not_taken = None
            for r, c in enumerate(chunks):
                is_max = c == mx
                win = is_max if not_taken is None else jnp.logical_and(is_max, not_taken)
                term = jnp.where(win, c, 0.0) * w2d[r:r + 1, :]
                acc_out = term if acc_out is None else acc_out + term
                lose = jnp.logical_not(win)
                not_taken = lose if not_taken is None else jnp.logical_and(not_taken, lose)
            out = acc_out + b2_ref[...]
        else:  # "sigmoid" path of DendriteLayer.forward_sigmoid
            acc_out = None
            for r, c in enumerate(chunks):
                term = jax.nn.sigmoid(c) * w2d[r:r + 1, :]
                acc_out = term if acc_out is None else acc_out + term
            out = acc_out + b2_ref[...]

        out_ref[...] = out.astype(out_ref.dtype)


def prepare_dendrite_params(params, *, out_dim, dpn, max_k_tile=512):
    """One-time parameter preprocessing (mask folding, permutation, padding).

    Dendrite axis is permuted from PyTorch's unit-major order j = i*dpn + r to
    dendrite-major j' = r*out_dim + i, so unit i's r-th dendrite sits at lane i
    of the r-th out_dim-wide chunk. The DendriteOutput weight reduces to its
    (dpn, out_dim) block diagonal in this layout.
    """
    W1 = jnp.asarray(params["W1"], jnp.float32)   # (n_dend, in_dim)
    b1 = jnp.asarray(params["b1"], jnp.float32)   # (n_dend,)
    M1 = jnp.asarray(params["M1"], jnp.float32)   # (n_dend, in_dim)
    W2 = jnp.asarray(params["W2"], jnp.float32)   # (out_dim, n_dend)
    b2 = jnp.asarray(params["b2"], jnp.float32)   # (out_dim,)
    M2 = jnp.asarray(params["M2"], jnp.float32)   # (out_dim, n_dend)

    n_dend = out_dim * dpn
    in_dim = W1.shape[1]

    out_dim_p = _round_up(out_dim, 128)           # lane-align k-winner chunks
    if in_dim <= max_k_tile:
        k_tile, in_dim_p = in_dim, in_dim
    else:
        k_tile = max_k_tile
        in_dim_p = _round_up(in_dim, max_k_tile)

    # perm[j'] = old index j for new (dendrite-major) position j'
    perm = np.arange(n_dend).reshape(out_dim, dpn).T.reshape(-1)

    # Fold sparsity mask, permute, transpose, pad, cast to bf16 for the MXU.
    w1_eff = (W1 * M1)[perm, :].T                                  # (in_dim, n_dend)
    w1p = jnp.pad(w1_eff.reshape(in_dim, dpn, out_dim),
                  ((0, in_dim_p - in_dim), (0, 0), (0, out_dim_p - out_dim)))
    w1p = w1p.reshape(in_dim_p, dpn * out_dim_p).astype(jnp.bfloat16)

    b1p = jnp.pad(b1[perm].reshape(1, dpn, out_dim),
                  ((0, 0), (0, 0), (0, out_dim_p - out_dim)))
    b1p = b1p.reshape(1, dpn * out_dim_p)

    # Block-diagonal DendriteOutput weight: w2_diag[r, i] = (W2*M2)[i, i*dpn + r]
    w2_eff = (W2 * M2).reshape(out_dim, out_dim, dpn)
    w2d = jnp.diagonal(w2_eff, axis1=0, axis2=1)                   # (dpn, out_dim)
    w2d = jnp.pad(w2d, ((0, 0), (0, out_dim_p - out_dim)))

    b2p = jnp.pad(b2[None, :], ((0, 0), (0, out_dim_p - out_dim)))

    return dict(w1p=w1p, b1p=b1p, w2d=w2d, b2p=b2p,
                in_dim=in_dim, in_dim_p=in_dim_p, k_tile=k_tile,
                out_dim=out_dim, out_dim_p=out_dim_p, dpn=dpn)


def dendrite_layer_forward(x, prep, cat_projection=1.0, *,
                           act_fun_type="kwinner", batch_tile=128):
    B = x.shape[0]
    in_dim, in_dim_p = prep["in_dim"], prep["in_dim_p"]
    out_dim, out_dim_p = prep["out_dim"], prep["out_dim_p"]
    dpn, k_tile = prep["dpn"], prep["k_tile"]
    n_dend_p = dpn * out_dim_p

    # Batch tile: multiple of 8, padded batch so ragged sizes are handled.
    bt = min(batch_tile, _round_up(B, 8))
    bt = max(8, (bt // 8) * 8)
    B_p = _round_up(B, bt)

    x_p = jnp.pad(x.astype(jnp.float32),
                  ((0, B_p - B), (0, in_dim_p - in_dim))).astype(jnp.bfloat16)
    cat = jnp.full((1, 1), cat_projection, dtype=jnp.float32)

    grid = (B_p // bt, in_dim_p // k_tile)
    kernel = functools.partial(_dendrite_kernel, out_dim_p=out_dim_p, dpn=dpn,
                               act_fun_type=act_fun_type)
    out = pl.pallas_call(
        kernel,
        out_shape=jax.ShapeDtypeStruct((B_p, out_dim_p), jnp.float32),
        grid=grid,
        in_specs=[
            pl.BlockSpec(memory_space=pltpu.MemorySpace.SMEM),          # cat (1,1)
            pl.BlockSpec((bt, k_tile), lambda i, k: (i, k)),            # x (bf16)
            pl.BlockSpec((k_tile, n_dend_p), lambda i, k: (k, 0)),      # W1 folded (bf16)
            pl.BlockSpec((1, n_dend_p), lambda i, k: (0, 0)),           # b1
            pl.BlockSpec((dpn, out_dim_p), lambda i, k: (0, 0)),        # W2 block diag
            pl.BlockSpec((1, out_dim_p), lambda i, k: (0, 0)),          # b2
        ],
        out_specs=pl.BlockSpec((bt, out_dim_p), lambda i, k: (i, 0)),
        scratch_shapes=[pltpu.VMEM((bt, n_dend_p), jnp.float32)],       # f32 accumulator
        compiler_params=pltpu.CompilerParams(
            dimension_semantics=("parallel", "arbitrary")),
    )(cat, x_p, prep["w1p"], prep["b1p"], prep["w2d"], prep["b2p"])
    return out[:B, :out_dim]


# ----------------------------- parameter init ------------------------------
def init_params(key, in_dim, out_dim, dpn, weight_sparsity=0.2):
    """Deterministic synthetic init matching the module's parameter shapes."""
    n_dend = out_dim * dpn
    k1, k2, k3, k4 = jax.random.split(key, 4)
    # DendriteInput: nn.Linear(in_dim, n_dendrites) wrapped in SparseWeights(0.2)
    bound1 = 1.0 / np.sqrt(in_dim)
    W1 = jax.random.uniform(k1, (n_dend, in_dim), jnp.float32, -bound1, bound1)
    b1 = jax.random.uniform(k2, (n_dend,), jnp.float32, -bound1, bound1)
    n_zero = int(round((1.0 - weight_sparsity) * in_dim))
    scores = jax.random.uniform(k3, (n_dend, in_dim))
    ranks = jnp.argsort(jnp.argsort(scores, axis=1), axis=1)
    M1 = (ranks >= n_zero).astype(jnp.float32)
    # DendriteOutput: weight (out_dim, dpn*out_dim) kaiming_uniform, bias zeros
    bound2 = np.sqrt(6.0 / n_dend)
    W2 = jax.random.uniform(k4, (out_dim, n_dend), jnp.float32, -bound2, bound2)
    b2 = jnp.zeros((out_dim,), jnp.float32)
    # dend_mask: unit i only sees dendrites [i*dpn, (i+1)*dpn)
    M2 = jnp.repeat(jnp.eye(out_dim, dtype=jnp.float32), dpn, axis=0).T
    return dict(W1=W1, b1=b1, M1=M1, W2=W2, b2=b2, M2=M2)


# --------------------- pure-JAX reference (torch semantics) -----------------
def reference_forward(x, params, cat_projection, *, out_dim, dpn, act_fun_type):
    W1, b1, M1 = params["W1"], params["b1"], params["M1"]
    W2, b2, M2 = params["W2"], params["b2"], params["M2"]
    # Same effective precision as the kernel: bf16 operands, f32 accumulation.
    w1_eff = (W1 * M1).astype(jnp.bfloat16)
    d = jnp.dot(x.astype(jnp.bfloat16), w1_eff.T,
                preferred_element_type=jnp.float32) + b1
    d = d * cat_projection
    if act_fun_type == "kwinner":
        d3 = d.reshape(x.shape[0], out_dim, dpn)
        idx = jnp.argmax(d3, axis=-1)
        onehot = jax.nn.one_hot(idx, dpn, dtype=d3.dtype)
        act = (d3 * onehot).reshape(x.shape[0], out_dim * dpn)
    else:
        act = jax.nn.sigmoid(d)
    return jnp.dot(act, (W2 * M2).T, precision=jax.lax.Precision.HIGHEST) + b2


if __name__ == "__main__":
    in_dim, out_dim, dpn = 64, 128, 4
    B = 256                      # bigger batch so batch_tile=128 -> 2 grid steps
    cat_projection = 0.5

    key = jax.random.PRNGKey(0)
    kx, kp = jax.random.split(key)
    x = jax.random.normal(kx, (B, in_dim), dtype=jnp.float32)
    params = init_params(kp, in_dim, out_dim, dpn, weight_sparsity=0.2)
    prep = prepare_dendrite_params(params, out_dim=out_dim, dpn=dpn)

    # default path: act_fun_type='kwinner'
    out = dendrite_layer_forward(x, prep, cat_projection,
                                 act_fun_type="kwinner", batch_tile=128)
    out = jax.block_until_ready(out)
    ref = reference_forward(x, params, cat_projection,
                            out_dim=out_dim, dpn=dpn, act_fun_type="kwinner")
    assert out.shape == (B, out_dim)
    np.testing.assert_allclose(np.asarray(out), np.asarray(ref), rtol=1e-3, atol=1e-3)

    # sigmoid path
    out_s = dendrite_layer_forward(x, prep, cat_projection,
                                   act_fun_type="sigmoid", batch_tile=128)
    out_s = jax.block_until_ready(out_s)
    ref_s = reference_forward(x, params, cat_projection,
                              out_dim=out_dim, dpn=dpn, act_fun_type="sigmoid")
    np.testing.assert_allclose(np.asarray(out_s), np.asarray(ref_s), rtol=1e-3, atol=1e-3)

    print("KERNEL_OK")
</pallas_src>

<mosaic_0001>
module attributes {stable_mosaic.version = 11 : i64} {
  func.func @_dendrite_kernel(%arg0: i32, %arg1: i32, %arg2: memref<1x1xf32, #tpu.memory_space<smem>>, %arg3: memref<128x64xbf16, #tpu.memory_space<vmem>>, %arg4: memref<64x512xbf16, #tpu.memory_space<vmem>>, %arg5: memref<1x512xf32, #tpu.memory_space<vmem>>, %arg6: memref<4x128xf32, #tpu.memory_space<vmem>>, %arg7: memref<1x128xf32, #tpu.memory_space<vmem>>, %arg8: memref<128x128xf32, #tpu.memory_space<vmem>>, %arg9: memref<128x512xf32, #tpu.memory_space<vmem>>) attributes {dimension_semantics = [#tpu.dimension_semantics<parallel>, #tpu.dimension_semantics<arbitrary>], iteration_bounds = array<i64: 2, 1>, scalar_prefetch = 0 : i64, scratch_operands = 1 : i64, tpu.core_type = #tpu.core_type<tc>, window_params = [{transform_indices = @transform_0, window_bounds = array<i64: 1, 1>}, {transform_indices = @transform_1, window_bounds = array<i64: 128, 64>}, {transform_indices = @transform_2, window_bounds = array<i64: 64, 512>}, {pipeline_mode = #tpu.pipeline_mode<synchronous>, transform_indices = @transform_3, window_bounds = array<i64: 1, 512>}, {pipeline_mode = #tpu.pipeline_mode<synchronous>, transform_indices = @transform_4, window_bounds = array<i64: 4, 128>}, {pipeline_mode = #tpu.pipeline_mode<synchronous>, transform_indices = @transform_5, window_bounds = array<i64: 1, 128>}, {transform_indices = @transform_6, window_bounds = array<i64: 128, 128>}]} {
    %c0_i32 = arith.constant 0 : i32
    %0 = arith.cmpi eq, %arg1, %c0_i32 : i32
    %1 = arith.extui %0 : i1 to i32
    %c0_i32_0 = arith.constant 0 : i32
    %2 = arith.cmpi ne, %1, %c0_i32_0 : i32
    scf.if %2 {
      %cst_10 = arith.constant 0.000000e+00 : f32
      %12 = vector.broadcast %cst_10 : f32 to vector<128x512xf32>
      %c0_11 = arith.constant 0 : index
      %c0_12 = arith.constant 0 : index
      %13 = vector.load %arg9[%c0_11, %c0_12] : memref<128x512xf32, #tpu.memory_space<vmem>>, vector<128x512xf32>
      tpu.vector_store %arg9[%c0_11, %c0_12], %12 {strides = array<i32>} : memref<128x512xf32, #tpu.memory_space<vmem>>, vector<128x512xf32>,
    } else {
    }
    %c0 = arith.constant 0 : index
    %c0_1 = arith.constant 0 : index
    %3 = vector.load %arg9[%c0, %c0_1] : memref<128x512xf32, #tpu.memory_space<vmem>>, vector<128x512xf32>
    %c0_2 = arith.constant 0 : index
    %c0_3 = arith.constant 0 : index
    %4 = vector.load %arg3[%c0_2, %c0_3] : memref<128x64xbf16, #tpu.memory_space<vmem>>, vector<128x64xbf16>
    %c0_4 = arith.constant 0 : index
    %c0_5 = arith.constant 0 : index
    %5 = vector.load %arg4[%c0_4, %c0_5] : memref<64x512xbf16, #tpu.memory_space<vmem>>, vector<64x512xbf16>
    %cst = arith.constant dense<0.000000e+00> : vector<128x512xf32>
    %6 = tpu.matmul %4, %5, %cst {dimension_numbers = #tpu.dot_dimension_numbers<[1], [0], [0], [1], [0, 0, 1, 1], [], []>} : vector<128x64xbf16>, vector<64x512xbf16>, vector<128x512xf32> -> vector<128x512xf32>
    %7 = arith.addf %3, %6 : vector<128x512xf32>
    %c0_6 = arith.constant 0 : index
    %c0_7 = arith.constant 0 : index
    %8 = vector.load %arg9[%c0_6, %c0_7] : memref<128x512xf32, #tpu.memory_space<vmem>>, vector<128x512xf32>
    tpu.vector_store %arg9[%c0_6, %c0_7], %7 {strides = array<i32>} : memref<128x512xf32, #tpu.memory_space<vmem>>, vector<128x512xf32>,
    %c0_i32_8 = arith.constant 0 : i32
    %9 = arith.cmpi eq, %arg1, %c0_i32_8 : i32
    %10 = arith.extui %9 : i1 to i32
    %c0_i32_9 = arith.constant 0 : i32
    %11 = arith.cmpi ne, %10, %c0_i32_9 : i32
    scf.if %11 {
      %c0_10 = arith.constant 0 : index
      %c0_11 = arith.constant 0 : index
      %12 = memref.load %arg2[%c0_10, %c0_11] : memref<1x1xf32, #tpu.memory_space<smem>>
      %c0_12 = arith.constant 0 : index
      %c0_13 = arith.constant 0 : index
      %13 = vector.load %arg9[%c0_12, %c0_13] : memref<128x512xf32, #tpu.memory_space<vmem>>, vector<128x512xf32>
      %c0_14 = arith.constant 0 : index
      %c0_15 = arith.constant 0 : index
      %14 = vector.load %arg5[%c0_14, %c0_15] : memref<1x512xf32, #tpu.memory_space<vmem>>, vector<1x512xf32>
      %15 = vector.broadcast %14 : vector<1x512xf32> to vector<128x512xf32>
      %16 = arith.addf %13, %15 : vector<128x512xf32>
      %17 = vector.broadcast %12 : f32 to vector<128x512xf32>
      %18 = arith.mulf %16, %17 : vector<128x512xf32>
      %c0_16 = arith.constant 0 : index
      %c0_17 = arith.constant 0 : index
      %19 = vector.load %arg6[%c0_16, %c0_17] : memref<4x128xf32, #tpu.memory_space<vmem>>, vector<4x128xf32>
      %20 = vector.extract_strided_slice %18 {offsets = [0, 0], sizes = [128, 128], strides = [1, 1]} : vector<128x512xf32> to vector<128x128xf32>
      %21 = vector.extract_strided_slice %18 {offsets = [0, 128], sizes = [128, 128], strides = [1, 1]} : vector<128x512xf32> to vector<128x128xf32>
      %22 = vector.extract_strided_slice %18 {offsets = [0, 256], sizes = [128, 128], strides = [1, 1]} : vector<128x512xf32> to vector<128x128xf32>
      %23 = vector.extract_strided_slice %18 {offsets = [0, 384], sizes = [128, 128], strides = [1, 1]} : vector<128x512xf32> to vector<128x128xf32>
      %24 = arith.maximumf %20, %21 : vector<128x128xf32>
      %25 = arith.maximumf %24, %22 : vector<128x128xf32>
      %26 = arith.maximumf %25, %23 : vector<128x128xf32>
      %27 = arith.cmpf oeq, %20, %26 : vector<128x128xf32>
      %cst_18 = arith.constant 0.000000e+00 : f32
      %28 = vector.broadcast %cst_18 : f32 to vector<128x128xf32>
      %29 = arith.select %27, %20, %28 : vector<128x128xi1>, vector<128x128xf32>
      %30 = vector.extract_strided_slice %19 {offsets = [0, 0], sizes = [1, 128], strides = [1, 1]} : vector<4x128xf32> to vector<1x128xf32>
      %31 = vector.broadcast %30 : vector<1x128xf32> to vector<128x128xf32>
      %32 = arith.mulf %29, %31 : vector<128x128xf32>
      %cst_19 = arith.constant dense<true> : vector<128x128xi1>
      %33 = arith.xori %27, %cst_19 : vector<128x128xi1>
      %34 = arith.cmpf oeq, %21, %26 : vector<128x128xf32>
      %35 = arith.andi %34, %33 : vector<128x128xi1>
      %cst_20 = arith.constant 0.000000e+00 : f32
      %36 = vector.broadcast %cst_20 : f32 to vector<128x128xf32>
      %37 = arith.select %35, %21, %36 : vector<128x128xi1>, vector<128x128xf32>
      %38 = vector.extract_strided_slice %19 {offsets = [1, 0], sizes = [1, 128], strides = [1, 1]} : vector<4x128xf32> to vector<1x128xf32>
      %39 = vector.broadcast %38 : vector<1x128xf32> to vector<128x128xf32>
      %40 = arith.mulf %37, %39 : vector<128x128xf32>
      %41 = arith.addf %32, %40 : vector<128x128xf32>
      %cst_21 = arith.constant dense<true> : vector<128x128xi1>
      %42 = arith.xori %35, %cst_21 : vector<128x128xi1>
      %43 = arith.andi %33, %42 : vector<128x128xi1>
      %44 = arith.cmpf oeq, %22, %26 : vector<128x128xf32>
      %45 = arith.andi %44, %43 : vector<128x128xi1>
      %cst_22 = arith.constant 0.000000e+00 : f32
      %46 = vector.broadcast %cst_22 : f32 to vector<128x128xf32>
      %47 = arith.select %45, %22, %46 : vector<128x128xi1>, vector<128x128xf32>
      %48 = vector.extract_strided_slice %19 {offsets = [2, 0], sizes = [1, 128], strides = [1, 1]} : vector<4x128xf32> to vector<1x128xf32>
      %49 = vector.broadcast %48 : vector<1x128xf32> to vector<128x128xf32>
      %50 = arith.mulf %47, %49 : vector<128x128xf32>
      %51 = arith.addf %41, %50 : vector<128x128xf32>
      %cst_23 = arith.constant dense<true> : vector<128x128xi1>
      %52 = arith.xori %45, %cst_23 : vector<128x128xi1>
      %53 = arith.andi %43, %52 : vector<128x128xi1>
      %54 = arith.cmpf oeq, %23, %26 : vector<128x128xf32>
      %55 = arith.andi %54, %53 : vector<128x128xi1>
      %cst_24 = arith.constant 0.000000e+00 : f32
      %56 = vector.broadcast %cst_24 : f32 to vector<128x128xf32>
      %57 = arith.select %55, %23, %56 : vector<128x128xi1>, vector<128x128xf32>
      %58 = vector.extract_strided_slice %19 {offsets = [3, 0], sizes = [1, 128], strides = [1, 1]} : vector<4x128xf32> to vector<1x128xf32>
      %59 = vector.broadcast %58 : vector<1x128xf32> to vector<128x128xf32>
      %60 = arith.mulf %57, %59 : vector<128x128xf32>
      %61 = arith.addf %51, %60 : vector<128x128xf32>
      %c0_25 = arith.constant 0 : index
      %c0_26 = arith.constant 0 : index
      %62 = vector.load %arg7[%c0_25, %c0_26] : memref<1x128xf32, #tpu.memory_space<vmem>>, vector<1x128xf32>
      %63 = vector.broadcast %62 : vector<1x128xf32> to vector<128x128xf32>
      %64 = arith.addf %61, %63 : vector<128x128xf32>
      %c0_27 = arith.constant 0 : index
      %c0_28 = arith.constant 0 : index
      %65 = vector.load %arg8[%c0_27, %c0_28] : memref<128x128xf32, #tpu.memory_space<vmem>>, vector<128x128xf32>
      tpu.vector_store %arg8[%c0_27, %c0_28], %64 {strides = array<i32>} : memref<128x128xf32, #tpu.memory_space<vmem>>, vector<128x128xf32>,
    } else {
    }
    return
  }
  func.func @transform_0(%arg0: i32, %arg1: i32) -> (i32, i32) {
    %c0_i32 = arith.constant 0 : i32
    %c0_i32_0 = arith.constant 0 : i32
    %c0_i32_1 = arith.constant 0 : i32
    return %c0_i32, %c0_i32_0 : i32, i32
  }
  func.func @transform_1(%arg0: i32, %arg1: i32) -> (i32, i32) {
    %c0_i32 = arith.constant 0 : i32
    return %arg0, %arg1 : i32, i32
  }
  func.func @transform_2(%arg0: i32, %arg1: i32) -> (i32, i32) {
    %c0_i32 = arith.constant 0 : i32
    %c0_i32_0 = arith.constant 0 : i32
    return %arg1, %c0_i32 : i32, i32
  }
  func.func @transform_3(%arg0: i32, %arg1: i32) -> (i32, i32) {
    %c0_i32 = arith.constant 0 : i32
    %c0_i32_0 = arith.constant 0 : i32
    %c0_i32_1 = arith.constant 0 : i32
    return %c0_i32, %c0_i32_0 : i32, i32
  }
  func.func @transform_4(%arg0: i32, %arg1: i32) -> (i32, i32) {
    %c0_i32 = arith.constant 0 : i32
    %c0_i32_0 = arith.constant 0 : i32
    %c0_i32_1 = arith.constant 0 : i32
    return %c0_i32, %c0_i32_0 : i32, i32
  }
  func.func @transform_5(%arg0: i32, %arg1: i32) -> (i32, i32) {
    %c0_i32 = arith.constant 0 : i32
    %c0_i32_0 = arith.constant 0 : i32
    %c0_i32_1 = arith.constant 0 : i32
    return %c0_i32, %c0_i32_0 : i32, i32
  }
  func.func @transform_6(%arg0: i32, %arg1: i32) -> (i32, i32) {
    %c0_i32 = arith.constant 0 : i32
    %c0_i32_0 = arith.constant 0 : i32
    return %arg0, %c0_i32 : i32, i32
  }
}

</mosaic_0001>

<bundles_post_ra>
// kernel: tpu_custom_call.1
= control target key start
LH: loop header
LB: loop body
LE: loop exit
PB: predicated region body
PF: predicated region fallthrough
CT: control target
= control target key end

     0   :  { %s3570_s0 = inlined_call_operand.<no memory space> [shape: f32[1,1], index: 0, kind: input, shape index: {}]   ;;  %s3571_s1 = inlined_call_operand.vmem [shape: bf16[256,64], index: 1, kind: input, shape index: {}]   ;;  %s3572_s2 = inlined_call_operand.vmem [shape: bf16[64,512], index: 2, kind: input, shape index: {}]   ;;  %s3573_s3 = inlined_call_operand.vmem [shape: f32[1,512], index: 3, kind: input, shape index: {}]   ;;  %s3574_s4 = inlined_call_operand.vmem [shape: f32[4,128], index: 4, kind: input, shape index: {}]   ;;  %s3575_s5 = inlined_call_operand.vmem [shape: f32[1,128], index: 5, kind: input, shape index: {}]   ;;  %s3576_s6 = inlined_call_operand.hbm [shape: f32[256,128], index: 6, kind: output, shape index: {}]  }
   0x1   :  { %11 = sst [smem:[#allocation3]] %s3570_s0 }
   0x2   :  { %12 = vsyncpa [#allocation5], 0 }
   0x3   :  { %14 = vsyncpa [#allocation5 + $0x1], 0  ;;  %s2030_s23 = smov 0   ;;  %s2032_s24 = smov 0  }
   0x4   :  { %s2034_s25 = smov 0   ;;  %s2036_s26 = smov 0  }
   0x5   :  { %s2038_s27 = smov 0   ;;  %s2040_s28 = smov 0  }
   0x6 LB: > { %s1759_s0 = sadd.s32 4294967295, %s1985_s28   ;;  %s1760_s29 = sadd.s32 4294967294, %s1985_s28   ;;  %s1985_s28 = sphi %s2040_s28, %s20_s28   ;;  %s1981_s27 = sphi %s2038_s27, %s3669_s27   ;;  %s1977_s26 = sphi %s2036_s26, %s3668_s26   ;;  %s1973_s25 = sphi %s2034_s25, %s3667_s25   ;;  %s1969_s24 = sphi %s2032_s24, %s3666_s24   ;;  %s1965_s23 = sphi %s2030_s23, %s3665_s23  }
   0x7   : > { %s32_s30 = sadd.s32 1, %s1981_s27  ;;  %s177_s7 = sadd.s32 1, %s1973_s25 }
   0x8   : > { %p34_p0 = scmp.ge.s32.totalorder %s32_s30, 2  ;;  %p187_p1 = scmp.ne.s32.totalorder %s1973_s25, %s1969_s24 }
   0x9   : > { %p188_p2 = scmp.eq.s32.totalorder %s1759_s0, 1  ;;  %p193_p3 = scmp.ne.s32.totalorder %s1969_s24, %s1965_s23 }
   0xa   : > { %s3671_s30 = smov (%p34_p0, %s32_s30), 0  ;;  %p194_p5 = scmp.eq.s32.totalorder %s1760_s29, 1 }
   0xb   : > { %p2070_p4 = por %p188_p2, %p187_p1  ;;  %s174_s9 = ssub.s32 %s1981_s27, %s3671_s30 }
   0xc   : > { %p1764_p6 = scmp.ge.s32.totalorder %s1985_s28, 1  ;;  %p175_p7 = scmp.eq.s32.totalorder %s174_s9, 0 }
   0xd   : > { %p2077_p8 = por %p194_p5, %p193_p3  ;;  %p246_p9 = scmp.lt.s32.totalorder %s1985_s28, 3 }
   0xe   : > { %s2083_s11 = scalar_select %p175_p7, %s1973_s25, %s177_s7  }
   0xf   : > { %p247_p10 = pnand %p1764_p6, %p246_p9 }
  0x11   : > { %250 = sbr.rel (%p247_p10) target bundleno = 417 (0x1a1), region = 44 }
  0x18   : > { %v1874_v0 = vld [vmem:[%s3572_s2 + $0x4] ss:$16 sps:$4 sm:$0xff]   ;;  %s1766_s14 = sshll.u32 %s1977_s26, 4  ;;  %v1876_v1 = vld [vmem:[%s3572_s2 + $0xc] ss:$16 sps:$4 sm:$0xff]   ;;  %v1987_v2 = vmov 0   ;;  %v1036_v25 = vlaneseq }
  0x19   : > { %644 = vmatprep.mubr.bf16.mxu0 %v1987_v2  ;;  %757 = vmatprep.mubr.bf16.mxu1 %v1987_v2  ;;  %p286_p11 = scmp.lt.s32.totalorder %s1766_s14, 31  ;;  %v1878_v3 = vld [vmem:[%s3572_s2] ss:$16 sps:$4 sm:$0xff]   ;;  %v1879_v4 = vld [vmem:[%s3572_s2 + $0x8] ss:$16 sps:$4 sm:$0xff]   ;;  %vm587_vm0 = vcmask 523264  }
  0x1a   : > { %612 = vmatprep.subr.bf16.mxu0 %v1874_v0  ;;  %725 = vmatprep.subr.bf16.mxu1 %v1876_v1  ;;  %v1880_v5 = vld [vmem:[%s3572_s2 + $0x24] ss:$16 sps:$4 sm:$0xff]   ;;  %v1882_v6 = vld [vmem:[%s3572_s2 + $0x2c] ss:$16 sps:$4 sm:$0xff]   ;;  %v1884_v7 = vld [vmem:[%s3572_s2 + $0x20] ss:$16 sps:$4 sm:$0xff]  }
  0x1b   : > { %s3673_s14 = smov (!%p286_p11, %s1766_s14), 31  ;;  %613 = vmatpush1.bf16.msra.mxu0 %v1878_v3  ;;  %726 = vmatpush1.bf16.msra.mxu1 %v1879_v4  ;;  %v1885_v8 = vld [vmem:[%s3572_s2 + $0x28] ss:$16 sps:$4 sm:$0xff]   ;;  %v1886_v9 = vld [vmem:[%s3572_s2 + $0x44] ss:$16 sps:$4 sm:$0xff]   ;;  %v1037_v26 = vshrl.u32 %v1036_v25, 7 }
  0x1c   : > { %614 = vmatprep.subr.bf16.mxu0 %v1880_v5  ;;  %727 = vmatprep.subr.bf16.mxu1 %v1882_v6  ;;  %s1767_s17 = sshll.u32 %s3673_s14, 2  ;;  %v1888_v10 = vld [vmem:[%s3572_s2 + $0x4c] ss:$16 sps:$4 sm:$0xff]   ;;  %v1890_v11 = vld [vmem:[%s3572_s2 + $0x40] ss:$16 sps:$4 sm:$0xff]   ;;  %vm1988_vm5 = vmmov 1  }
  0x1d   : > { %v1891_v12 = vld [vmem:[%s3572_s2 + $0x48] ss:$16 sps:$4 sm:$0xff]   ;;  %v1892_v13 = vld [vmem:[%s3572_s2 + $0x64] ss:$16 sps:$4 sm:$0xff]   ;;  %v1894_v14 = vld [vmem:[%s3572_s2 + $0x6c] ss:$16 sps:$4 sm:$0xff]   ;;  %s2133_s15 = scalar_lea.vmem %s3571_s1, %s1767_s17 }
  0x1e   : > { %v1896_v15 = vld [vmem:[%s3572_s2 + $0x60] ss:$16 sps:$4 sm:$0xff]   ;;  %v1897_v16 = vld [vmem:[%s3572_s2 + $0x68] ss:$16 sps:$4 sm:$0xff]   ;;  %s969_s17 = sld [smem:[#allocation3]]  ;;  %v1038_v27 = vsub.s32 0, %v1037_v26 }
  0x1f   : > { %615 = vmatpush1.bf16.msra.mxu0 %v1884_v7  ;;  %728 = vmatpush1.bf16.msra.mxu1 %v1885_v8  ;;  %v1898_v17 = vld [vmem:[%s2133_s15] sm:$0xff]   ;;  %v1899_v18 = vld [vmem:[%s2133_s15 + $0x8] sm:$0xff]   ;;  %v1900_v19 = vld [vmem:[%s2133_s15 + $0x10] sm:$0xff]   ;;  %v1046_v28 = vsub.s32 2, %v1037_v26  ;;  %v1042_v30 = vsub.s32 1, %v1037_v26  ;;  %v1050_v31 = vsub.s32 3, %v1037_v26 }
  0x20   : > { %616 = vmatprep.subr.bf16.mxu0 %v1886_v9  ;;  %729 = vmatprep.subr.bf16.mxu1 %v1888_v10  ;;  %v1901_v20 = vld [vmem:[%s2133_s15 + $0x18] sm:$0xff]   ;;  %v1902_v21 = vld [vmem:[%s2133_s15 + $0x20] sm:$0xff]   ;;  %v1903_v22 = vld [vmem:[%s2133_s15 + $0x28] sm:$0xff]   ;;  %s282_s7 = sand.u32 1, %s1969_s24   ;;  %s1814_s18 = sshll.u32 %s1977_s26, 11 }
  0x21   : > { %v1904_v23 = vld [vmem:[%s2133_s15 + $0x30] sm:$0xff]   ;;  %v1905_v24 = vld [vmem:[%s2133_s15 + $0x38] sm:$0xff]   ;;  %v1034_v29 = vld [vmem:[%s3573_s3] sm:$0xf]  ;;  %s2356_s14 = sshll.u32 %s282_s7, 7  ;;  %s3517_s21 = scalar_lea.hbm %s3576_s6, %s1814_s18 }
  0x22   : > { %v2182_v32 = vrot.slane %v1034_v29, %v1038_v27  ;;  %v2184_v33 = vrot.slane %v1034_v29, %v1046_v28  ;;  %v2186_v34 = vrot.slane %v1034_v29, %v1042_v30  ;;  %v2188_v35 = vrot.slane %v1034_v29, %v1050_v31  ;;  %v1185_v53 = vld [vmem:[%s3574_s4] sm:$0xf]  ;;  %s2440_s13 = scalar_lea.vmem [#allocation4], %s2356_s14  ;;  %s3524_s22 = scalar_lea.sflag [#allocation5], %s282_s7 }
  0x23   : > { %617 = vmatpush1.bf16.msra.mxu0 %v1890_v11  ;;  %730 = vmatpush1.bf16.msra.mxu1 %v1891_v12  ;;  %v2213_v59 = vrot.slane %v1185_v53, %v1038_v27  ;;  %v2215_v60 = vrot.slane %v1185_v53, %v1042_v30  ;;  %v2227_v4 = vrot.slane %v1185_v53, %v1046_v28  ;;  %s1671_s19 = sshll.u32 %s2440_s13, 4  ;;  %s1989_s26 = smov [#allocation4]   ;;  %s3519_s19 = int_to_ptr.vmem [resolvable:$true] %s1671_s19 }
  0x24   : > { %618 = vmatprep.subr.bf16.mxu0 %v1892_v13  ;;  %731 = vmatprep.subr.bf16.mxu1 %v1894_v14  ;;  %v2190_v37 = vstv %s969_s17  ;;  %v2229_v5 = vrot.slane %v1185_v53, %v1050_v31  ;;  %s1907_s0 = scalar_lea.vmem %s3519_s19, 2048  ;;  %s1911_s29 = sshll.u32 %s1989_s26, 4  ;;  %s1912_s29 = int_to_ptr.vmem [resolvable:$false] %s1911_s29 }
  0x25   : > { %p1908_p12 = scmp.ne.s32.totalorder %s3519_s19, %s1907_s0  ;;  %s1913_s14 = scalar_lea.vmem %s1912_s29, 4096 }
  0x26   : > { %p1914_p1 = scmp.lt.s32.totalorder %s3519_s19, %s1912_s29  ;;  %p1915_p2 = scmp.lt.s32.totalorder %s1913_s14, %s1907_s0 }
  0x27   : > { %619 = vmatpush1.bf16.msra.mxu0 %v1896_v15  ;;  %732 = vmatpush1.bf16.msra.mxu1 %v1897_v16  ;;  %p1909_p13 = pnand %p1908_p12, %p2070_p4 }
  0x28   : > { %p1916_p3 = por %p1915_p2, %p1914_p1 }
  0x29   : > { %p1910_p0 = pneg %p1909_p13 }
  0x2a   : > { %1792 = vmatmul.mubr.msk.bf16.vlgmr.msra.gmra.mrb[0].mxu0 %vm587_vm0, %v1898_v17  ;;  %1800 = vmatmul.mubr.msk.bf16.vlgmr.msra.gmra.mrb[0].mxu1 %vm587_vm0, %v1898_v17 }
  0x2b   : > { %654 = vmatprep.mubr.bf16.mxu0 %v1987_v2  ;;  %767 = vmatprep.mubr.bf16.mxu1 %v1987_v2  ;;  %p1917_p5 = pnand %p1916_p3, %p1910_p0 }
  0x32   : > { %1793 = vmatmul.mubr.msk.bf16.gmra.mrb[4].mxu0 %vm587_vm0, %v1899_v18  ;;  %1801 = vmatmul.mubr.msk.bf16.gmra.mrb[4].mxu1 %vm587_vm0, %v1899_v18 }
  0x33   : > { %664 = vmatprep.mubr.bf16.mxu0 %v1987_v2  ;;  %777 = vmatprep.mubr.bf16.mxu1 %v1987_v2 }
  0x3a   : > { %1794 = vmatmul.mubr.msk.bf16.gmra.mrb[8].mxu0 %vm587_vm0, %v1900_v19  ;;  %1802 = vmatmul.mubr.msk.bf16.gmra.mrb[8].mxu1 %vm587_vm0, %v1900_v19 }
  0x3b   : > { %674 = vmatprep.mubr.bf16.mxu0 %v1987_v2  ;;  %787 = vmatprep.mubr.bf16.mxu1 %v1987_v2 }
  0x42   : > { %1795 = vmatmul.mubr.msk.bf16.gmra.mrb[12].mxu0 %vm587_vm0, %v1901_v20  ;;  %1803 = vmatmul.mubr.msk.bf16.gmra.mrb[12].mxu1 %vm587_vm0, %v1901_v20 }
  0x43   : > { %684 = vmatprep.mubr.bf16.mxu0 %v1987_v2  ;;  %797 = vmatprep.mubr.bf16.mxu1 %v1987_v2 }
  0x4a   : > { %1796 = vmatmul.mubr.msk.bf16.gmra.mrb[16].mxu0 %vm587_vm0, %v1902_v21  ;;  %1804 = vmatmul.mubr.msk.bf16.gmra.mrb[16].mxu1 %vm587_vm0, %v1902_v21 }
  0x4b   : > { %694 = vmatprep.mubr.bf16.mxu0 %v1987_v2  ;;  %807 = vmatprep.mubr.bf16.mxu1 %v1987_v2 }
  0x52   : > { %1797 = vmatmul.mubr.msk.bf16.gmra.mrb[20].mxu0 %vm587_vm0, %v1903_v22  ;;  %1805 = vmatmul.mubr.msk.bf16.gmra.mrb[20].mxu1 %vm587_vm0, %v1903_v22 }
  0x53   : > { %704 = vmatprep.mubr.bf16.mxu0 %v1987_v2  ;;  %817 = vmatprep.mubr.bf16.mxu1 %v1987_v2 }
  0x5a   : > { %1798 = vmatmul.mubr.msk.bf16.gmra.mrb[24].mxu0 %vm587_vm0, %v1904_v23  ;;  %1806 = vmatmul.mubr.msk.bf16.gmra.mrb[24].mxu1 %vm587_vm0, %v1904_v23 }
  0x5b   : > { %714 = vmatprep.mubr.bf16.mxu0 %v1987_v2  ;;  %827 = vmatprep.mubr.bf16.mxu1 %v1987_v2 }
  0x62   : > { %1799 = vmatmul.mubr.msk.bf16.gmra.mrb[28].mxu0 %vm587_vm0, %v1905_v24  ;;  %1807 = vmatmul.mubr.msk.bf16.gmra.mrb[28].mxu1 %vm587_vm0, %v1905_v24 }
  0xfd   : > { %v646_v36 = vpop.f32.mrb[0].mxu0  ;;  %v759_v38 = vpop.f32.mrb[0].mxu1 }
  0xfe   : > { %v1056_v39 = vadd.f32 %v2182_v32, %v646_v36  ;;  %v1058_v40 = vadd.f32 %v2184_v33, %v759_v38  ;;  %v648_v41 = vpop.f32.mrb[1].mxu0  ;;  %v761_v42 = vpop.f32.mrb[1].mxu1 }
  0xff   : > { %v1057_v43 = vadd.f32 %v2186_v34, %v648_v41  ;;  %v650_v44 = vpop.f32.mrb[2].mxu0  ;;  %v763_v45 = vpop.f32.mrb[2].mxu1  ;;  %v1059_v47 = vadd.f32 %v2188_v35, %v761_v42 }
 0x100   : > { %v1121_v46 = vmul.f32 %v2190_v37, %v1056_v39  ;;  %v1060_v48 = vadd.f32 %v2182_v32, %v650_v44  ;;  %v652_v49 = vpop.f32.mrb[3].mxu0  ;;  %v765_v50 = vpop.f32.mrb[3].mxu1  ;;  %v2199_v51 = vmul.f32 %v2190_v37, %v1058_v40  ;;  %v1062_v54 = vadd.f32 %v2184_v33, %v763_v45 }
 0x101   : > { %v1122_v52 = vmul.f32 %v2190_v37, %v1057_v43  ;;  %v1061_v55 = vadd.f32 %v2186_v34, %v652_v49  ;;  %v1063_v61 = vadd.f32 %v2188_v35, %v765_v50  ;;  %v2219_v62 = vmul.f32 %v2190_v37, %v1059_v47 }
 0x102   : > { %v2208_v56 = vmul.f32 %v2190_v37, %v1060_v48  ;;  %v2223_v0 = vmul.f32 %v2190_v37, %v1062_v54 }
 0x103   : > { %v1186_v57 = vmax.f32 %v1121_v46, %v1122_v52  ;;  %v2211_v58 = vmul.f32 %v2190_v37, %v1061_v55  ;;  %v2238_v16 = vmul.f32 %v2190_v37, %v1063_v61 }
 0x105   : > { %v1202_v63 = vmax.f32 %v1186_v57, %v2199_v51  ;;  %v1187_v1 = vmax.f32 %v2208_v56, %v2211_v58  ;;  %v656_v2 = vpop.f32.mrb[4].mxu0  ;;  %v769_v3 = vpop.f32.mrb[4].mxu1 }
 0x106   : > { %v1064_v6 = vadd.f32 %v2182_v32, %v656_v2  ;;  %v1066_v7 = vadd.f32 %v2184_v33, %v769_v3  ;;  %v658_v8 = vpop.f32.mrb[5].mxu0  ;;  %v771_v9 = vpop.f32.mrb[5].mxu1 }
 0x107   : > { %v1218_v10 = vmax.f32 %v1202_v63, %v2219_v62  ;;  %v1203_v11 = vmax.f32 %v1187_v1, %v2223_v0  ;;  %v1065_v12 = vadd.f32 %v2186_v34, %v658_v8  ;;  %v1067_v13 = vadd.f32 %v2188_v35, %v771_v9  ;;  %v660_v14 = vpop.f32.mrb[6].mxu0  ;;  %v773_v15 = vpop.f32.mrb[6].mxu1 }
 0x108   : > { %v2241_v17 = vmul.f32 %v2190_v37, %v1064_v6  ;;  %v2244_v18 = vmul.f32 %v2190_v37, %v1066_v7  ;;  %v1068_v19 = vadd.f32 %v2182_v32, %v660_v14  ;;  %v662_v20 = vpop.f32.mrb[7].mxu0  ;;  %v775_v21 = vpop.f32.mrb[7].mxu1  ;;  %v1070_v26 = vadd.f32 %v2184_v33, %v773_v15 }
 0x109   : > { %vm1234_vm1 = vcmp.eq.f32.partialorder %v1121_v46, %v1218_v10  ;;  %vm1302_vm2 = vcmp.eq.f32.partialorder %v1122_v52, %v1218_v10  ;;  %vm1418_vm3 = vcmp.eq.f32.partialorder %v2199_v51, %v1218_v10  ;;  %vm1534_vm4 = vcmp.eq.f32.partialorder %v2219_v62, %v1218_v10 }
 0x10a   : > { %v1250_v22 = vsel %vm1234_vm1, %v1121_v46, 0.0  ;;  %vm2250_vm6 = vmxor %vm1234_vm1, %vm1988_vm5  ;;  %v2255_v24 = vmax.f32 %v1203_v11, %v2238_v16  ;;  %v2258_v25 = vmul.f32 %v2190_v37, %v1065_v12  ;;  %v2265_v28 = vmul.f32 %v2190_v37, %v1067_v13 }
 0x10b   : > { %v1270_v27 = vmul.f32 %v2213_v59, %v1250_v22  ;;  %vm1318_vm7 = vmand %vm1302_vm2, %vm2250_vm6  ;;  %v2268_v29 = vmul.f32 %v2190_v37, %v1068_v19  ;;  %v1069_v30 = vadd.f32 %v2186_v34, %v662_v20  ;;  %v2303_v43 = vmul.f32 %v2190_v37, %v1070_v26 }
 0x10c   : > { %v1334_v31 = vsel %vm1318_vm7, %v1122_v52, 0.0  ;;  %vm2272_vm8 = vmxor %vm1318_vm7, %vm1988_vm5  ;;  %vm1235_vm9 = vcmp.eq.f32.partialorder %v2208_v56, %v2255_v24  ;;  %vm1303_vm10 = vcmp.eq.f32.partialorder %v2211_v58, %v2255_v24  ;;  %vm1419_vm11 = vcmp.eq.f32.partialorder %v2223_v0, %v2255_v24 }
 0x10d   : > { %v1354_v38 = vmul.f32 %v2215_v60, %v1334_v31  ;;  %vm1402_vm12 = vmand %vm2250_vm6, %vm2272_vm8  ;;  %v1251_v39 = vsel %vm1235_vm9, %v2208_v56, 0.0  ;;  %vm1535_vm13 = vcmp.eq.f32.partialorder %v2238_v16, %v2255_v24  ;;  %v1188_v40 = vmax.f32 %v2241_v17, %v2258_v25  ;;  %v666_v41 = vpop.f32.mrb[8].mxu0  ;;  %v779_v42 = vpop.f32.mrb[8].mxu1  ;;  %v2373_v56 = vld [vmem:[%s3575_s5] ss:$0 sm:$0xff] }
 0x10e   : > { %vm1434_vm14 = vmand %vm1418_vm3, %vm1402_vm12  ;;  %v2306_v44 = vmul.f32 %v2190_v37, %v1069_v30  ;;  %v1071_v45 = vadd.f32 %v2188_v35, %v775_v21  ;;  %v1072_v46 = vadd.f32 %v2182_v32, %v666_v41  ;;  %v668_v47 = vpop.f32.mrb[9].mxu0  ;;  %v781_v48 = vpop.f32.mrb[9].mxu1  ;;  %v1074_v53 = vadd.f32 %v2184_v33, %v779_v42 }
 0x10f   : > { %v1370_v49 = vadd.f32 %v1354_v38, %v1270_v27  ;;  %v1450_v50 = vsel %vm1434_vm14, %v2199_v51, 0.0  ;;  %vm1502_vm15 = vmxor %vm1434_vm14, %vm1988_vm5  ;;  %v1204_v52 = vmax.f32 %v1188_v40, %v2244_v18  ;;  %v670_v54 = vpop.f32.mrb[10].mxu0  ;;  %v2314_v55 = vpop.f32.mrb[10].mxu1  ;;  %v1271_v51 = vmul.f32 %v2213_v59, %v1251_v39 }
 0x110   : > { %v1470_v57 = vmul.f32 %v2227_v4, %v1450_v50  ;;  %vm1518_vm0 = vmand %vm1402_vm12, %vm1502_vm15  ;;  %v1189_v61 = vmax.f32 %v2268_v29, %v2306_v44  ;;  %v2327_v63 = vmul.f32 %v2190_v37, %v1071_v45  ;;  %v672_v1 = vpop.f32.mrb[11].mxu0  ;;  %v2329_v2 = vpop.f32.mrb[11].mxu1  ;;  %v2337_v6 = vmul.f32 %v2190_v37, %v1072_v46 }
 0x111   : > { %vm1550_vm1 = vmand %vm1534_vm4, %vm1518_vm0  ;;  %v2334_v3 = vmax.f32 %v1204_v52, %v2265_v28  ;;  %v2340_v7 = vmul.f32 %v2190_v37, %v1074_v53  ;;  %v1073_v8 = vadd.f32 %v2186_v34, %v668_v47  ;;  %v1075_v13 = vadd.f32 %v2188_v35, %v781_v48 }
 0x112   : > { %v1486_v9 = vadd.f32 %v1470_v57, %v1370_v49  ;;  %v1566_v11 = vsel %vm1550_vm1, %v2219_v62, 0.0  ;;  %vm2348_vm2 = vmxor %vm1235_vm9, %vm1988_vm5  ;;  %v1205_v12 = vmax.f32 %v1189_v61, %v2303_v43  ;;  %v1076_v23 = vadd.f32 %v2182_v32, %v670_v54 }
 0x113   : > { %v1586_v14 = vmul.f32 %v2229_v5, %v1566_v11  ;;  %vm1319_vm3 = vmand %vm1303_vm10, %vm2348_vm2  ;;  %vm1236_vm4 = vcmp.eq.f32.partialorder %v2241_v17, %v2334_v3  ;;  %vm1304_vm6 = vcmp.eq.f32.partialorder %v2258_v25, %v2334_v3  ;;  %vm1420_vm7 = vcmp.eq.f32.partialorder %v2244_v18, %v2334_v3 }
 0x114   : > { %v1335_v62 = vsel %vm1319_vm3, %v2211_v58, 0.0  ;;  %vm2377_vm8 = vmxor %vm1319_vm3, %vm1988_vm5  ;;  %v1252_v19 = vsel %vm1236_vm4, %v2241_v17, 0.0  ;;  %vm1536_vm9 = vcmp.eq.f32.partialorder %v2265_v28, %v2334_v3  ;;  %v2388_v20 = vmax.f32 %v1205_v12, %v2327_v63 }
 0x115   : > { %v1602_v21 = vadd.f32 %v1586_v14, %v1486_v9  ;;  %v1355_v22 = vmul.f32 %v2215_v60, %v1335_v62  ;;  %vm1403_vm10 = vmand %vm2348_vm2, %vm2377_vm8  ;;  %v2396_v58 = vmul.f32 %v2190_v37, %v1073_v8  ;;  %v676_v26 = vpop.f32.mrb[12].mxu0  ;;  %v789_v27 = vpop.f32.mrb[12].mxu1  ;;  %v2447_v49 = vmul.f32 %v2190_v37, %v1075_v13 }
 0x116   : > { %vm1435_vm12 = vmand %vm1419_vm11, %vm1403_vm10  ;;  %vm1237_vm14 = vcmp.eq.f32.partialorder %v2268_v29, %v2388_v20  ;;  %vm1305_vm15 = vcmp.eq.f32.partialorder %v2306_v44, %v2388_v20  ;;  %vm1421_vm0 = vcmp.eq.f32.partialorder %v2303_v43, %v2388_v20  ;;  %vm1537_vm1 = vcmp.eq.f32.partialorder %v2327_v63, %v2388_v20  ;;  %v678_v30 = vpop.f32.mrb[13].mxu0  ;;  %v2415_v31 = vpop.f32.mrb[13].mxu1 }
 0x117   : > { %v1625_v36 = vadd.f32 %v2373_v56, %v1602_v21  ;;  %v1371_v38 = vadd.f32 %v1355_v22, %v1271_v51  ;;  %v1451_v39 = vsel %vm1435_vm12, %v2223_v0, 0.0  ;;  %vm1503_vm11 = vmxor %vm1435_vm12, %vm1988_vm5  ;;  %v1253_v40 = vsel %vm1237_vm14, %v2268_v29, 0.0  ;;  %v2424_v41 = vpop.f32.mrb[14].mxu0  ;;  %v2426_v42 = vpop.f32.mrb[14].mxu1 }
 0x118   : > { %v1471_v45 = vmul.f32 %v2227_v4, %v1451_v39  ;;  %vm1519_vm3 = vmand %vm1403_vm10, %vm1503_vm11  ;;  %v1272_v0 = vmul.f32 %v2213_v59, %v1252_v19  ;;  %v1190_v46 = vmax.f32 %v2337_v6, %v2396_v58  ;;  %v682_v47 = vpop.f32.mrb[15].mxu0  ;;  %v2437_v48 = vpop.f32.mrb[15].mxu1  ;;  %v2450_v50 = vmul.f32 %v2190_v37, %v1076_v23 }
 0x119   : > { %1641 = vst [vmem:[%s2440_s13] sm:$0xff] %v1625_v36  ;;  %vm1551_vm12 = vmand %vm1535_vm13, %vm1519_vm3  ;;  %v1078_v52 = vadd.f32 %v2184_v33, %v2314_v55  ;;  %v1077_v53 = vadd.f32 %v2186_v34, %v672_v1  ;;  %v1080_v61 = vadd.f32 %v2182_v32, %v676_v26  ;;  %v1079_v55 = vadd.f32 %v2188_v35, %v2329_v2 }
 0x11a   : > { %v1487_v54 = vadd.f32 %v1471_v45, %v1371_v38  ;;  %v1567_v57 = vsel %vm1551_vm12, %v2238_v16, 0.0  ;;  %vm2460_vm2 = vmxor %vm1236_vm4, %vm1988_vm5  ;;  %v1206_v51 = vmax.f32 %v1190_v46, %v2340_v7  ;;  %v1082_v12 = vadd.f32 %v2184_v33, %v789_v27 }
 0x11b   : > { %v1587_v8 = vmul.f32 %v2229_v5, %v1567_v57  ;;  %vm1320_vm13 = vmand %vm1304_vm6, %vm2460_vm2  ;;  %v2473_v16 = vmul.f32 %v2190_v37, %v1078_v52  ;;  %v2476_v17 = vmul.f32 %v2190_v37, %v1077_v53  ;;  %v2490_v10 = vmul.f32 %v2190_v37, %v1080_v61 }
 0x11c   : > { %v1336_v1 = vsel %vm1320_vm13, %v2258_v25, 0.0  ;;  %vm2482_vm4 = vmxor %vm1320_vm13, %vm1988_vm5  ;;  %v2487_v11 = vmax.f32 %v1206_v51, %v2447_v49  ;;  %v1081_v2 = vadd.f32 %v2186_v34, %v678_v30  ;;  %v2544_v39 = vmul.f32 %v2190_v37, %v1079_v55 }
 0x11d   : > { %v1603_v13 = vadd.f32 %v1587_v8, %v1487_v54  ;;  %v1356_v14 = vmul.f32 %v2215_v60, %v1336_v1  ;;  %vm1404_vm6 = vmand %vm2460_vm2, %vm2482_vm4  ;;  %v1191_v25 = vmax.f32 %v2450_v50, %v2476_v17  ;;  %v2501_v62 = vpop.f32.mrb[16].mxu0  ;;  %v2503_v15 = vpop.f32.mrb[16].mxu1  ;;  %v2556_v52 = vmul.f32 %v2190_v37, %v1082_v12 }
 0x11e   : > { %vm1436_vm8 = vmand %vm1420_vm7, %vm1404_vm6  ;;  %vm1238_vm10 = vcmp.eq.f32.partialorder %v2337_v6, %v2487_v11  ;;  %vm1306_vm11 = vcmp.eq.f32.partialorder %v2396_v58, %v2487_v11  ;;  %vm1422_vm3 = vcmp.eq.f32.partialorder %v2340_v7, %v2487_v11  ;;  %vm1538_vm12 = vcmp.eq.f32.partialorder %v2447_v49, %v2487_v11  ;;  %v2521_v19 = vpop.f32.mrb[17].mxu0  ;;  %v2523_v21 = vpop.f32.mrb[17].mxu1 }
 0x11f   : > { %v1626_v22 = vadd.f32 %v2373_v56, %v1603_v13  ;;  %v1372_v23 = vadd.f32 %v1356_v14, %v1272_v0  ;;  %v1452_v26 = vsel %vm1436_vm8, %v2244_v18, 0.0  ;;  %vm1504_vm7 = vmxor %vm1436_vm8, %vm1988_vm5  ;;  %v1254_v27 = vsel %vm1238_vm10, %v2337_v6, 0.0  ;;  %v2532_v30 = vpop.f32.mrb[18].mxu0  ;;  %v2534_v36 = vpop.f32.mrb[18].mxu1 }
 0x120   : > { %v1472_v38 = vmul.f32 %v2227_v4, %v1452_v26  ;;  %vm1520_vm13 = vmand %vm1404_vm6, %vm1504_vm7  ;;  %v1273_v18 = vmul.f32 %v2213_v59, %v1253_v40  ;;  %v1207_v45 = vmax.f32 %v1191_v25, %v2473_v16  ;;  %v2547_v0 = vpop.f32.mrb[19].mxu0  ;;  %v2549_v46 = vpop.f32.mrb[19].mxu1  ;;  %v2559_v53 = vmul.f32 %v2190_v37, %v1081_v2 }
 0x121   : > { %1642 = vst [vmem:[%s2440_s13 + $0x8] sm:$0xff] %v1626_v22  ;;  %vm1552_vm8 = vmand %vm1536_vm9, %vm1520_vm13  ;;  %v1083_v40 = vadd.f32 %v2188_v35, %v2415_v31  ;;  %v1084_v54 = vadd.f32 %v2182_v32, %v2424_v41  ;;  %v1085_v61 = vadd.f32 %v2186_v34, %v682_v47  ;;  %v1086_v41 = vadd.f32 %v2184_v33, %v2426_v42 }
 0x122   : > { %v1488_v57 = vadd.f32 %v1472_v38, %v1372_v23  ;;  %v1568_v24 = vsel %vm1552_vm8, %v2265_v28, 0.0  ;;  %vm2570_vm9 = vmxor %vm1237_vm14, %vm1988_vm5  ;;  %v2575_v51 = vmax.f32 %v1207_v45, %v2544_v39  ;;  %v1192_v28 = vmax.f32 %v2490_v10, %v2559_v53 }
 0x123   : > { %v1588_v31 = vmul.f32 %v2229_v5, %v1568_v24  ;;  %vm1321_vm2 = vmand %vm1305_vm15, %vm2570_vm9  ;;  %v2587_v29 = vmul.f32 %v2190_v37, %v1084_v54  ;;  %v1274_v12 = vmul.f32 %v2213_v59, %v1254_v27  ;;  %v2628_v13 = vmul.f32 %v2190_v37, %v1083_v40 }
 0x124   : > { %v1337_v8 = vsel %vm1321_vm2, %v2306_v44, 0.0  ;;  %vm2593_vm14 = vmxor %vm1321_vm2, %vm1988_vm5  ;;  %vm1239_vm4 = vcmp.eq.f32.partialorder %v2450_v50, %v2575_v51  ;;  %vm1307_vm15 = vcmp.eq.f32.partialorder %v2476_v17, %v2575_v51  ;;  %vm1423_vm6 = vcmp.eq.f32.partialorder %v2473_v16, %v2575_v51 }
 0x125   : > { %v1604_v55 = vadd.f32 %v1588_v31, %v1488_v57  ;;  %v1357_v1 = vmul.f32 %v2215_v60, %v1337_v8  ;;  %vm1405_vm7 = vmand %vm2570_vm9, %vm2593_vm14  ;;  %v1255_v44 = vsel %vm1239_vm4, %v2450_v50, 0.0  ;;  %vm1539_vm13 = vcmp.eq.f32.partialorder %v2544_v39, %v2575_v51  ;;  %v2614_v42 = vpop.f32.mrb[20].mxu0  ;;  %v2616_v9 = vpop.f32.mrb[20].mxu1 }
 0x126   : > { %vm1437_vm8 = vmand %vm1421_vm0, %vm1405_vm7  ;;  %v1208_v14 = vmax.f32 %v1192_v28, %v2556_v52  ;;  %v2632_v25 = vmul.f32 %v2190_v37, %v1085_v61  ;;  %v2634_v2 = vpop.f32.mrb[21].mxu0  ;;  %v2636_v22 = vpop.f32.mrb[21].mxu1  ;;  %v1087_v27 = vadd.f32 %v2188_v35, %v2437_v48  ;;  %v1088_v48 = vadd.f32 %v2182_v32, %v2501_v62 }
 0x127   : > { %v1627_v23 = vadd.f32 %v2373_v56, %v1604_v55  ;;  %v1373_v26 = vadd.f32 %v1357_v1, %v1273_v18  ;;  %v1453_v38 = vsel %vm1437_vm8, %v2303_v43, 0.0  ;;  %vm1505_vm0 = vmxor %vm1437_vm8, %vm1988_vm5  ;;  %v2643_v45 = vpop.f32.mrb[22].mxu0  ;;  %v2645_v40 = vpop.f32.mrb[22].mxu1  ;;  %v2669_v3 = vmul.f32 %v2190_v37, %v1086_v41 }
 0x128   : > { %v1473_v54 = vmul.f32 %v2227_v4, %v1453_v38  ;;  %vm1521_vm2 = vmand %vm1405_vm7, %vm1505_vm0  ;;  %v2654_v18 = vmax.f32 %v1208_v14, %v2628_v13  ;;  %v1193_v43 = vmax.f32 %v2587_v29, %v2632_v25  ;;  %v2660_v57 = vpop.f32.mrb[23].mxu0  ;;  %v2662_v24 = vpop.f32.mrb[23].mxu1  ;;  %v2672_v61 = vmul.f32 %v2190_v37, %v1087_v27 }
 0x129   : > { %1643 = vst [vmem:[%s2440_s13 + $0x10] sm:$0xff] %v1627_v23  ;;  %vm1553_vm8 = vmand %vm1537_vm1, %vm1521_vm2  ;;  %v1090_v31 = vadd.f32 %v2184_v33, %v2503_v15  ;;  %v1089_v62 = vadd.f32 %v2186_v34, %v2521_v19  ;;  %v2715_v47 = vmul.f32 %v2190_v37, %v1088_v48  ;;  %v1091_v55 = vadd.f32 %v2188_v35, %v2523_v21 }
 0x12a   : > { %v1489_v28 = vadd.f32 %v1473_v54, %v1373_v26  ;;  %v1569_v8 = vsel %vm1553_vm8, %v2327_v63, 0.0  ;;  %vm2683_vm1 = vmxor %vm1238_vm10, %vm1988_vm5  ;;  %vm1240_vm9 = vcmp.eq.f32.partialorder %v2490_v10, %v2654_v18  ;;  %v1209_v41 = vmax.f32 %v1193_v43, %v2669_v3 }
 0x12b   : > { %v1589_v15 = vmul.f32 %v2229_v5, %v1569_v8  ;;  %vm1322_vm7 = vmand %vm1306_vm11, %vm2683_vm1  ;;  %v2701_v63 = vsel %vm1240_vm9, %v2490_v10, 0.0  ;;  %v2728_v23 = vmul.f32 %v2190_v37, %v1089_v62  ;;  %v1275_v21 = vmul.f32 %v2213_v59, %v1255_v44 }
 0x12c   : > { %v1338_v6 = vsel %vm1322_vm7, %v2396_v58, 0.0  ;;  %vm2709_vm2 = vmxor %vm1322_vm7, %vm1988_vm5  ;;  %v2725_v58 = vmul.f32 %v2190_v37, %v1090_v31  ;;  %v2744_v27 = vmax.f32 %v1209_v41, %v2672_v61  ;;  %v1092_v54 = vadd.f32 %v2182_v32, %v2532_v30 }
 0x12d   : > { %v1605_v1 = vadd.f32 %v1589_v15, %v1489_v28  ;;  %v1358_v14 = vmul.f32 %v2215_v60, %v1338_v6  ;;  %vm1406_vm11 = vmand %vm2683_vm1, %vm2709_vm2  ;;  %v2730_v26 = vpop.f32.mrb[24].mxu0  ;;  %v2732_v38 = vpop.f32.mrb[24].mxu1  ;;  %v1194_v44 = vmax.f32 %v2715_v47, %v2728_v23  ;;  %v2788_v6 = vmul.f32 %v2190_v37, %v1091_v55 }
 0x12e   : > { %3604 = vst [vmem:[#allocation7_spill] sm:$0xff] %v2725_v58  ;;  %vm1438_vm8 = vmand %vm1422_vm3, %vm1406_vm11  ;;  %v2748_v43 = vpop.f32.mrb[25].mxu0  ;;  %v2750_v48 = vpop.f32.mrb[25].mxu1  ;;  %vm1241_vm0 = vcmp.eq.f32.partialorder %v2587_v29, %v2744_v27  ;;  %vm1425_vm10 = vcmp.eq.f32.partialorder %v2669_v3, %v2744_v27  ;;  %vm1541_vm1 = vcmp.eq.f32.partialorder %v2672_v61, %v2744_v27  ;;  %v1094_v55 = vadd.f32 %v2184_v33, %v2534_v36 }
 0x12f   : > { %v1628_v31 = vadd.f32 %v2373_v56, %v1605_v1  ;;  %v1374_v62 = vadd.f32 %v1358_v14, %v1274_v12  ;;  %v1454_v28 = vsel %vm1438_vm8, %v2340_v7, 0.0  ;;  %vm1506_vm3 = vmxor %vm1438_vm8, %vm1988_vm5  ;;  %v2757_v8 = vpop.f32.mrb[26].mxu0  ;;  %v2759_v15 = vpop.f32.mrb[26].mxu1  ;;  %vm1309_vm8 = vcmp.eq.f32.partialorder %v2632_v25, %v2744_v27  ;;  %3605 = vst [vmem:[#allocation8_spill] sm:$0xff] %v2788_v6 }
 0x130   : > { %v1474_v30 = vmul.f32 %v2227_v4, %v1454_v28  ;;  %vm1522_vm7 = vmand %vm1406_vm11, %vm1506_vm3  ;;  %v2773_v7 = vpop.f32.mrb[27].mxu0  ;;  %v2775_v12 = vpop.f32.mrb[27].mxu1  ;;  %v1257_v20 = vsel %vm1241_vm0, %v2587_v29, 0.0  ;;  %v1210_v19 = vmax.f32 %v1194_v44, %v2725_v58  ;;  %v2801_v14 = vmul.f32 %v2190_v37, %v1092_v54 }
 0x131   : > { %1644 = vst [vmem:[%s2440_s13 + $0x18] sm:$0xff] %v1628_v31  ;;  %vm1554_vm14 = vmand %vm1538_vm12, %vm1522_vm7  ;;  %v1093_v50 = vadd.f32 %v2186_v34, %v2547_v0  ;;  %v1095_v54 = vadd.f32 %v2188_v35, %v2549_v46  ;;  %v1096_v28 = vadd.f32 %v2182_v32, %v2614_v42  ;;  %v1098_v44 = vadd.f32 %v2184_v33, %v2616_v9 }
 0x132   : > { %v1490_v41 = vadd.f32 %v1474_v30, %v1374_v62  ;;  %v1570_v1 = vsel %vm1554_vm14, %v2447_v49, 0.0  ;;  %vm2796_vm12 = vmxor %vm1239_vm4, %vm1988_vm5  ;;  %v2812_v49 = vmax.f32 %v1210_v19, %v2788_v6  ;;  %v1097_v30 = vadd.f32 %v2186_v34, %v2634_v2 }
 0x133   : > { %v1590_v31 = vmul.f32 %v2229_v5, %v1570_v1  ;;  %vm1323_vm14 = vmand %vm1307_vm15, %vm2796_vm12  ;;  %v2862_v9 = vmul.f32 %v2190_v37, %v1093_v50  ;;  %v2882_v50 = vmul.f32 %v2190_v37, %v1094_v55  ;;  %v1276_v11 = vmul.f32 %v2213_v59, %v2701_v63 }
 0x134   : > { %v1339_v62 = vsel %vm1323_vm14, %v2476_v17, 0.0  ;;  %vm2820_vm4 = vmxor %vm1323_vm14, %vm1988_vm5  ;;  %vm1242_vm2 = vcmp.eq.f32.partialorder %v2715_v47, %v2812_v49  ;;  %vm1310_vm11 = vcmp.eq.f32.partialorder %v2728_v23, %v2812_v49  ;;  %vm1426_vm7 = vcmp.eq.f32.partialorder %v2725_v58, %v2812_v49 }
 0x135   : > { %v1606_v0 = vadd.f32 %v1590_v31, %v1490_v41  ;;  %v1359_v19 = vmul.f32 %v2215_v60, %v1339_v62  ;;  %vm1407_vm15 = vmand %vm2796_vm12, %vm2820_vm4  ;;  %v2839_v17 = vpop.f32.mrb[28].mxu0  ;;  %v2841_v46 = vpop.f32.mrb[28].mxu1  ;;  %v2855_v42 = vsel %vm1242_vm2, %v2715_v47, 0.0  ;;  %v2900_v55 = vmul.f32 %v2190_v37, %v1098_v44 }
 0x136   : > { %3610 = vst [vmem:[#allocation9_spill] sm:$0xff] %v2841_v46  ;;  %vm1439_vm3 = vmand %vm1423_vm6, %vm1407_vm15  ;;  %v2864_v2 = vpop.f32.mrb[29].mxu0  ;;  %v2866_v41 = vpop.f32.mrb[29].mxu1  ;;  %v2903_v36 = vmul.f32 %v2190_v37, %v1097_v30  ;;  %v2917_v63 = vmul.f32 %v2190_v37, %v1095_v54  ;;  %vm3614_vm12 = vcmp.eq.f32.partialorder %v2559_v53, %v2654_v18 }
 0x137   : > { %v1629_v1 = vadd.f32 %v2373_v56, %v1606_v0  ;;  %v1375_v31 = vadd.f32 %v1359_v19, %v1275_v21  ;;  %v1455_v62 = vsel %vm1439_vm3, %v2473_v16, 0.0  ;;  %vm1507_vm6 = vmxor %vm1439_vm3, %vm1988_vm5  ;;  %v2871_v46 = vpop.f32.mrb[30].mxu0  ;;  %v2873_v58 = vpop.f32.mrb[30].mxu1  ;;  %v1195_v16 = vmax.f32 %v2801_v14, %v2862_v9 }
 0x138   : > { %v1475_v6 = vmul.f32 %v2227_v4, %v1455_v62  ;;  %vm1523_vm14 = vmand %vm1407_vm15, %vm1507_vm6  ;;  %v2887_v21 = vmul.f32 %v2190_v37, %v1096_v28  ;;  %v2889_v0 = vpop.f32.mrb[31].mxu0  ;;  %v2891_v19 = vpop.f32.mrb[31].mxu1  ;;  %v1099_v28 = vadd.f32 %v2188_v35, %v2636_v22  ;;  %v1100_v22 = vadd.f32 %v2182_v32, %v2643_v45 }
 0x139   : > { %3611 = vst [vmem:[#allocation10_spill] sm:$0xff] %v2891_v19  ;;  %1645 = vst [vmem:[%s2440_s13 + $0x20] sm:$0xff] %v1629_v1  ;;  %v1211_v44 = vmax.f32 %v1195_v16, %v2882_v50 }
 0x13a   : > { %vm1555_vm3 = vmand %vm1539_vm13, %vm1523_vm14  ;;  %v1491_v62 = vadd.f32 %v1475_v6, %v1375_v31  ;;  %v1196_v10 = vmax.f32 %v2887_v21, %v2903_v36  ;;  %v1102_v31 = vadd.f32 %v2184_v33, %v2645_v40  ;;  %vm3617_vm14 = vcmp.eq.f32.partialorder %v2556_v52, %v2654_v18 }
 0x13b   : > { %v1571_v19 = vsel %vm1555_vm3, %v2544_v39, 0.0  ;;  %vm2912_vm13 = vmxor %vm1240_vm9, %vm1988_vm5  ;;  %v1277_v39 = vmul.f32 %v2213_v59, %v1257_v20  ;;  %v2938_v1 = vmax.f32 %v1211_v44, %v2917_v63  ;;  %v1101_v20 = vadd.f32 %v2186_v34, %v2660_v57 }
 0x13c   : > { %v1591_v30 = vmul.f32 %v2229_v5, %v1571_v19  ;;  %vm1324_vm4 = vmand %vm3614_vm12, %vm2912_vm13  ;;  %v1212_v45 = vmax.f32 %v1196_v10, %v2900_v55  ;;  %v1104_v10 = vadd.f32 %v2182_v32, %v2730_v26 }
 0x13d   : > { %v1340_v6 = vsel %vm1324_vm4, %v2559_v53, 0.0  ;;  %vm2933_vm9 = vmxor %vm1324_vm4, %vm1988_vm5  ;;  %v2950_v53 = vmul.f32 %v2190_v37, %v1099_v28  ;;  %vm1243_vm3 = vcmp.eq.f32.partialorder %v2801_v14, %v2938_v1  ;;  %vm1311_vm12 = vcmp.eq.f32.partialorder %v2862_v9, %v2938_v1 }
 0x13e   : > { %v1607_v16 = vadd.f32 %v1591_v30, %v1491_v62  ;;  %v1360_v19 = vmul.f32 %v2215_v60, %v1340_v6  ;;  %vm1408_vm15 = vmand %vm2912_vm13, %vm2933_vm9  ;;  %vm1427_vm4 = vcmp.eq.f32.partialorder %v2882_v50, %v2938_v1  ;;  %v2971_v62 = vsel %vm1243_vm3, %v2801_v14, 0.0 }
 0x13f   : > { %vm1440_vm6 = vmand %vm3617_vm14, %vm1408_vm15  ;;  %v2975_v44 = vmax.f32 %v1212_v45, %v2950_v53  ;;  %v2978_v30 = vmul.f32 %v2190_v37, %v1100_v22  ;;  %v1106_v6 = vadd.f32 %v2184_v33, %v2732_v38  ;;  %v1105_v22 = vadd.f32 %v2186_v34, %v2748_v43 }
 0x140   : > { %v1630_v40 = vadd.f32 %v2373_v56, %v1607_v16  ;;  %v1376_v57 = vadd.f32 %v1360_v19, %v1276_v11  ;;  %v1456_v28 = vsel %vm1440_vm6, %v2556_v52, 0.0  ;;  %vm1508_vm9 = vmxor %vm1440_vm6, %vm1988_vm5  ;;  %v2981_v11 = vmul.f32 %v2190_v37, %v1101_v20 }
 0x141   : > { %v1476_v51 = vmul.f32 %v2227_v4, %v1456_v28  ;;  %vm1524_vm14 = vmand %vm1408_vm15, %vm1508_vm9  ;;  %vm3618_vm6 = vcmp.eq.f32.partialorder %v2628_v13, %v2654_v18  ;;  %v1103_v52 = vadd.f32 %v2188_v35, %v2662_v24  ;;  %vm1244_vm9 = vcmp.eq.f32.partialorder %v2887_v21, %v2975_v44 }
 0x142   : > { %1646 = vst [vmem:[%s2440_s13 + $0x28] sm:$0xff] %v1630_v40  ;;  %vm1556_vm13 = vmand %vm3618_vm6, %vm1524_vm14  ;;  %v3018_v29 = vsel %vm1244_vm9, %v2887_v21, 0.0  ;;  %vm1544_vm6 = vcmp.eq.f32.partialorder %v2950_v53, %v2975_v44  ;;  %v3031_v38 = vmul.f32 %v2190_v37, %v1102_v31  ;;  %v1197_v43 = vmax.f32 %v2978_v30, %v2981_v11 }
 0x143   : > { %v1492_v54 = vadd.f32 %v1476_v51, %v1376_v57  ;;  %v1572_v20 = vsel %vm1556_vm13, %v2628_v13, 0.0  ;;  %vm3000_vm15 = vmxor %vm1241_vm0, %vm1988_vm5  ;;  %vm1428_vm0 = vcmp.eq.f32.partialorder %v2900_v55, %v2975_v44  ;;  %v3036_v16 = vmul.f32 %v2190_v37, %v1104_v10 }
 0x144   : > { %v1592_v24 = vmul.f32 %v2229_v5, %v1572_v20  ;;  %vm1325_vm13 = vmand %vm1309_vm8, %vm3000_vm15  ;;  %v3047_v31 = vmul.f32 %v2190_v37, %v1105_v22  ;;  %v3053_v40 = vmul.f32 %v2190_v37, %v1103_v52  ;;  %v1213_v57 = vmax.f32 %v1197_v43, %v3031_v38 }
 0x145   : > { %v1341_v13 = vsel %vm1325_vm13, %v2632_v25, 0.0  ;;  %vm3026_vm14 = vmxor %vm1325_vm13, %vm1988_vm5  ;;  %v3044_v25 = vmul.f32 %v2190_v37, %v1106_v6  ;;  %v1107_v28 = vadd.f32 %v2188_v35, %v2750_v48  ;;  %v1278_v52 = vmul.f32 %v2213_v59, %v2855_v42 }
 0x146   : > { %v1608_v19 = vadd.f32 %v1592_v24, %v1492_v54  ;;  %v1361_v45 = vmul.f32 %v2215_v60, %v1341_v13  ;;  %vm1409_vm8 = vmand %vm3000_vm15, %vm3026_vm14  ;;  %v1198_v22 = vmax.f32 %v3036_v16, %v3047_v31  ;;  %v3067_v20 = vmax.f32 %v1213_v57, %v3053_v40 }
 0x147   : > { %vm1441_vm13 = vmand %vm1425_vm10, %vm1409_vm8  ;;  %v1108_v48 = vadd.f32 %v2182_v32, %v2757_v8  ;;  %v1110_v18 = vadd.f32 %v2184_v33, %v2759_v15  ;;  %v1109_v42 = vadd.f32 %v2186_v34, %v2773_v7  ;;  %v1112_v57 = vadd.f32 %v2182_v32, %v2839_v17 }
 0x148   : > { %v1631_v51 = vadd.f32 %v2373_v56, %v1608_v19  ;;  %v1377_v10 = vadd.f32 %v1361_v45, %v1277_v39  ;;  %v1457_v6 = vsel %vm1441_vm13, %v2669_v3, 0.0  ;;  %vm1509_vm15 = vmxor %vm1441_vm13, %vm1988_vm5  ;;  %v3076_v3 = vmul.f32 %v2190_v37, %v1107_v28  ;;  %v3627_v28 = vld [vmem:[#allocation7_spill] sm:$0xff] }
 0x149   : > { %v1477_v54 = vmul.f32 %v2227_v4, %v1457_v6  ;;  %vm1525_vm10 = vmand %vm1409_vm8, %vm1509_vm15  ;;  %v1214_v39 = vmax.f32 %v1198_v22, %v3044_v25  ;;  %v3122_v26 = vmul.f32 %v2190_v37, %v1108_v48  ;;  %v3125_v43 = vmul.f32 %v2190_v37, %v1109_v42  ;;  %v3628_v48 = vld [vmem:[#allocation8_spill] sm:$0xff]  ;;  %v3630_v42 = vld [vmem:[#allocation9_spill] sm:$0xff] }
 0x14a   : > { %1647 = vst [vmem:[%s2440_s13 + $0x30] sm:$0xff] %v1631_v51  ;;  %vm1557_vm14 = vmand %vm1541_vm1, %vm1525_vm10  ;;  %vm1245_vm1 = vcmp.eq.f32.partialorder %v2978_v30, %v3067_v20  ;;  %v1279_v22 = vmul.f32 %v2213_v59, %v2971_v62  ;;  %v1113_v62 = vadd.f32 %v2186_v34, %v2864_v2  ;;  %v1115_v14 = vadd.f32 %v2188_v35, %v2866_v41 }
 0x14b   : > { %v1493_v24 = vadd.f32 %v1477_v54, %v1377_v10  ;;  %v1573_v13 = vsel %vm1557_vm14, %v2672_v61, 0.0  ;;  %vm3088_vm8 = vmxor %vm1242_vm2, %vm1988_vm5  ;;  %v3106_v61 = vsel %vm1245_vm1, %v2978_v30, 0.0  ;;  %v3119_v7 = vmax.f32 %v1214_v39, %v3076_v3 }
 0x14c   : > { %v1593_v8 = vmul.f32 %v2229_v5, %v1573_v13  ;;  %vm1326_vm15 = vmand %vm1310_vm11, %vm3088_vm8  ;;  %v3160_v54 = vmul.f32 %v2190_v37, %v1110_v18  ;;  %v3169_v39 = vmul.f32 %v2190_v37, %v1112_v57  ;;  %v1116_v18 = vadd.f32 %v2182_v32, %v2871_v46 }
 0x14d   : > { %v1342_v47 = vsel %vm1326_vm15, %v2728_v23, 0.0  ;;  %vm3114_vm14 = vmxor %vm1326_vm15, %vm1988_vm5  ;;  %v1111_v23 = vadd.f32 %v2188_v35, %v2775_v12  ;;  %vm1246_vm10 = vcmp.eq.f32.partialorder %v3036_v16, %v3119_v7  ;;  %vm1314_vm2 = vcmp.eq.f32.partialorder %v3047_v31, %v3119_v7 }
 0x14e   : > { %v1609_v19 = vadd.f32 %v1593_v8, %v1493_v24  ;;  %v1362_v45 = vmul.f32 %v2215_v60, %v1342_v47  ;;  %vm1410_vm11 = vmand %vm3088_vm8, %vm3114_vm14  ;;  %vm1430_vm8 = vcmp.eq.f32.partialorder %v3044_v25, %v3119_v7  ;;  %v3154_v10 = vsel %vm1246_vm10, %v3036_v16, 0.0 }
 0x14f   : > { %vm1442_vm15 = vmand %vm1426_vm7, %vm1410_vm11  ;;  %v1114_v24 = vadd.f32 %v2184_v33, %v3630_v42  ;;  %v3187_v8 = vmul.f32 %v2190_v37, %v1111_v23  ;;  %v3197_v32 = vmul.f32 %v2190_v37, %v1113_v62  ;;  %v1118_v46 = vadd.f32 %v2184_v33, %v2873_v58 }
 0x150   : > { %v1632_v12 = vadd.f32 %v2373_v56, %v1609_v19  ;;  %v1378_v17 = vadd.f32 %v1362_v45, %v1278_v52  ;;  %v1458_v51 = vsel %vm1442_vm15, %v3627_v28, 0.0  ;;  %vm1510_vm13 = vmxor %vm1442_vm15, %vm1988_vm5  ;;  %v1199_v52 = vmax.f32 %v3122_v26, %v3125_v43 }
 0x151   : > { %v1478_v6 = vmul.f32 %v2227_v4, %v1458_v51  ;;  %vm1526_vm7 = vmand %vm1410_vm11, %vm1510_vm13  ;;  %vm3629_vm15 = vcmp.eq.f32.partialorder %v3628_v48, %v2812_v49  ;;  %v3213_v23 = vmul.f32 %v2190_v37, %v1114_v24  ;;  %v3216_v57 = vmul.f32 %v2190_v37, %v1116_v18 }
 0x152   : > { %1648 = vst [vmem:[%s2440_s13 + $0x38] sm:$0xff] %v1632_v12  ;;  %vm1558_vm14 = vmand %vm3629_vm15, %vm1526_vm7  ;;  %v1215_v47 = vmax.f32 %v1199_v52, %v3160_v54  ;;  %v1200_v33 = vmax.f32 %v3169_v39, %v3197_v32  ;;  %v1117_v58 = vadd.f32 %v2186_v34, %v2889_v0  ;;  %v3249_v51 = vmul.f32 %v2190_v37, %v1115_v14 }
 0x153   : > { %v1494_v13 = vadd.f32 %v1478_v6, %v1378_v17  ;;  %v1574_v27 = vsel %vm1558_vm14, %v3628_v48, 0.0  ;;  %vm3182_vm13 = vmxor %vm1243_vm3, %vm1988_vm5  ;;  %v3284_v21 = vmul.f32 %v2190_v37, %v1118_v46  ;;  %v1282_v16 = vmul.f32 %v2213_v59, %v3154_v10 }
 0x154   : > { %v1594_v2 = vmul.f32 %v2229_v5, %v1574_v27  ;;  %vm1327_vm11 = vmand %vm1311_vm12, %vm3182_vm13  ;;  %v3210_v45 = vmax.f32 %v1215_v47, %v3187_v8  ;;  %v1216_v6 = vmax.f32 %v1200_v33, %v3213_v23  ;;  %v1281_v33 = vmul.f32 %v2213_v59, %v3106_v61 }
 0x155   : > { %v1343_v15 = vsel %vm1327_vm11, %v2862_v9, 0.0  ;;  %vm3205_vm3 = vmxor %vm1327_vm11, %vm1988_vm5 }
 0x156   : > { %v1610_v41 = vadd.f32 %v1594_v2, %v1494_v13  ;;  %v1363_v28 = vmul.f32 %v2215_v60, %v1343_v15  ;;  %vm1411_vm12 = vmand %vm3182_vm13, %vm3205_vm3  ;;  %vm1247_vm7 = vcmp.eq.f32.partialorder %v3122_v26, %v3210_v45  ;;  %vm1315_vm15 = vcmp.eq.f32.partialorder %v3125_v43, %v3210_v45 }
 0x157   : > { %vm1443_vm14 = vmand %vm1427_vm4, %vm1411_vm12  ;;  %v3245_v12 = vsel %vm1247_vm7, %v3122_v26, 0.0  ;;  %v3271_v62 = vmax.f32 %v1216_v6, %v3249_v51 }
 0x158   : > { %v1633_v9 = vadd.f32 %v2373_v56, %v1610_v41  ;;  %v1379_v34 = vadd.f32 %v1363_v28, %v1279_v22  ;;  %v1459_v0 = vsel %vm1443_vm14, %v2882_v50, 0.0  ;;  %vm1511_vm3 = vmxor %vm1443_vm14, %vm1988_vm5  ;;  %v3253_v22 = vmul.f32 %v2190_v37, %v1117_v58  ;;  %v3636_v50 = vld [vmem:[#allocation10_spill] sm:$0xff] }
 0x159   : > { %v1479_v17 = vmul.f32 %v2227_v4, %v1459_v0  ;;  %vm1527_vm4 = vmand %vm1411_vm12, %vm1511_vm3  ;;  %vm3635_vm14 = vcmp.eq.f32.partialorder %v2917_v63, %v2938_v1  ;;  %v1119_v52 = vadd.f32 %v2188_v35, %v3636_v50  ;;  %v1280_v35 = vmul.f32 %v2213_v59, %v3018_v29 }
 0x15a   : > { %1649 = vst [vmem:[%s2440_s13 + $0x40] sm:$0xff] %v1633_v9  ;;  %vm1559_vm11 = vmand %vm3635_vm14, %vm1527_vm4  ;;  %v1201_v1 = vmax.f32 %v3216_v57, %v3253_v22  ;;  %vm1248_vm4 = vcmp.eq.f32.partialorder %v3169_v39, %v3271_v62  ;;  %v1283_v26 = vmul.f32 %v2213_v59, %v3245_v12 }
 0x15b   : > { %v1495_v48 = vadd.f32 %v1479_v17, %v1379_v34  ;;  %v1575_v42 = vsel %vm1559_vm11, %v2917_v63, 0.0  ;;  %vm3266_vm12 = vmxor %vm1244_vm9, %vm1988_vm5  ;;  %vm3639_vm11 = vcmp.eq.f32.partialorder %v2903_v36, %v2975_v44  ;;  %v3315_v49 = vmul.f32 %v2190_v37, %v1119_v52 }
 0x15c   : > { %v1595_v18 = vmul.f32 %v2229_v5, %v1575_v42  ;;  %vm1328_vm9 = vmand %vm3639_vm11, %vm3266_vm12  ;;  %v1217_v47 = vmax.f32 %v1201_v1, %v3284_v21 }
 0x15d   : > { %v1344_v63 = vsel %vm1328_vm9, %v2903_v36, 0.0  ;;  %vm3288_vm3 = vmxor %vm1328_vm9, %vm1988_vm5  ;;  %v3307_v36 = vsel %vm1248_vm4, %v3169_v39, 0.0 }
 0x15e   : > { %v1611_v29 = vadd.f32 %v1595_v18, %v1495_v48  ;;  %v1364_v27 = vmul.f32 %v2215_v60, %v1344_v63  ;;  %vm1412_vm11 = vmand %vm3266_vm12, %vm3288_vm3  ;;  %v3323_v19 = vmax.f32 %v1217_v47, %v3315_v49  ;;  %v1284_v39 = vmul.f32 %v2213_v59, %v3307_v36 }
 0x15f   : > { %vm1444_vm13 = vmand %vm1428_vm0, %vm1412_vm11 }
 0x160   : > { %v1634_v2 = vadd.f32 %v2373_v56, %v1611_v29  ;;  %v1380_v14 = vadd.f32 %v1364_v27, %v1280_v35  ;;  %v1460_v46 = vsel %vm1444_vm13, %v2900_v55, 0.0  ;;  %vm1512_vm12 = vmxor %vm1444_vm13, %vm1988_vm5  ;;  %vm3581_vm13 = vcmp.eq.f32.partialorder %v3216_v57, %v3323_v19 }
 0x161   : > { %v1480_v15 = vmul.f32 %v2227_v4, %v1460_v46  ;;  %vm1528_vm3 = vmand %vm1412_vm11, %vm1512_vm12  ;;  %vm3645_vm11 = vcmp.eq.f32.partialorder %v3031_v38, %v3067_v20 }
 0x162   : > { %1650 = vst [vmem:[%s2440_s13 + $0x48] sm:$0xff] %v1634_v2  ;;  %vm1560_vm0 = vmand %vm1544_vm6, %vm1528_vm3  ;;  %vm3644_vm6 = vcmp.eq.f32.partialorder %v2981_v11, %v3067_v20 }
 0x163   : > { %v1496_v37 = vadd.f32 %v1480_v15, %v1380_v14  ;;  %v1576_v41 = vsel %vm1560_vm0, %v2950_v53, 0.0  ;;  %vm3334_vm9 = vmxor %vm1245_vm1, %vm1988_vm5  ;;  %v3352_v53 = vsel %vm3581_vm13, %v3216_v57, 0.0  ;;  %vm3646_vm13 = vcmp.eq.f32.partialorder %v3053_v40, %v3067_v20 }
 0x164   : > { %v1596_v44 = vmul.f32 %v2229_v5, %v1576_v41  ;;  %vm1329_vm12 = vmand %vm3644_vm6, %vm3334_vm9 }
 0x165   : > { %v1345_v30 = vsel %vm1329_vm12, %v2981_v11, 0.0  ;;  %vm1397_vm0 = vmxor %vm1329_vm12, %vm1988_vm5 }
 0x166   : > { %v1612_v28 = vadd.f32 %v1596_v44, %v1496_v37  ;;  %v1365_v58 = vmul.f32 %v2215_v60, %v1345_v30  ;;  %vm1413_vm6 = vmand %vm3334_vm9, %vm1397_vm0 }
 0x167   : > { %vm1445_vm1 = vmand %vm3645_vm11, %vm1413_vm6 }
 0x168   : > { %v1635_v9 = vadd.f32 %v2373_v56, %v1612_v28  ;;  %v1381_v34 = vadd.f32 %v1365_v58, %v1281_v33  ;;  %v1461_v11 = vsel %vm1445_vm1, %v3031_v38, 0.0  ;;  %vm1513_vm12 = vmxor %vm1445_vm1, %vm1988_vm5 }
 0x169   : > { %v1481_v0 = vmul.f32 %v2227_v4, %v1461_v11  ;;  %vm1529_vm3 = vmand %vm1413_vm6, %vm1513_vm12 }
 0x16a   : > { %1651 = vst [vmem:[%s2440_s13 + $0x50] sm:$0xff] %v1635_v9  ;;  %vm1561_vm14 = vmand %vm3646_vm13, %vm1529_vm3  ;;  %vm3649_vm3 = vcmp.eq.f32.partialorder %v3076_v3, %v3119_v7 }
 0x16b   : > { %v1497_v61 = vadd.f32 %v1481_v0, %v1381_v34  ;;  %v1577_v17 = vsel %vm1561_vm14, %v3053_v40, 0.0  ;;  %vm3381_vm9 = vmxor %vm1246_vm10, %vm1988_vm5 }
 0x16c   : > { %v1597_v38 = vmul.f32 %v2229_v5, %v1577_v17  ;;  %vm1330_vm13 = vmand %vm1314_vm2, %vm3381_vm9 }
 0x16d   : > { %v1346_v20 = vsel %vm1330_vm13, %v3047_v31, 0.0  ;;  %vm1398_vm14 = vmxor %vm1330_vm13, %vm1988_vm5 }
 0x16e   : > { %v1613_v40 = vadd.f32 %v1597_v38, %v1497_v61  ;;  %v1366_v50 = vmul.f32 %v2215_v60, %v1346_v20  ;;  %vm1414_vm10 = vmand %vm3381_vm9, %vm1398_vm14  ;;  %vm3652_vm9 = vcmp.eq.f32.partialorder %v3160_v54, %v3210_v45 }
 0x16f   : > { %vm1446_vm11 = vmand %vm1430_vm8, %vm1414_vm10 }
 0x170   : > { %v1636_v52 = vadd.f32 %v2373_v56, %v1613_v40  ;;  %v1382_v48 = vadd.f32 %v1366_v50, %v1282_v16  ;;  %v1462_v31 = vsel %vm1446_vm11, %v3044_v25, 0.0  ;;  %vm1514_vm2 = vmxor %vm1446_vm11, %vm1988_vm5 }
 0x171   : > { %v1482_v42 = vmul.f32 %v2227_v4, %v1462_v31  ;;  %vm1530_vm1 = vmand %vm1414_vm10, %vm1514_vm2  ;;  %vm3653_vm10 = vcmp.eq.f32.partialorder %v3187_v8, %v3210_v45 }
 0x172   : > { %1652 = vst [vmem:[%s2440_s13 + $0x58] sm:$0xff] %v1636_v52  ;;  %vm1562_vm0 = vmand %vm3649_vm3, %vm1530_vm1  ;;  %vm3656_vm1 = vcmp.eq.f32.partialorder %v3197_v32, %v3271_v62 }
 0x173   : > { %v1498_v10 = vadd.f32 %v1482_v42, %v1382_v48  ;;  %v1578_v24 = vsel %vm1562_vm0, %v3076_v3, 0.0  ;;  %vm3414_vm8 = vmxor %vm1247_vm7, %vm1988_vm5 }
 0x174   : > { %v1598_v25 = vmul.f32 %v2229_v5, %v1578_v24  ;;  %vm1331_vm6 = vmand %vm1315_vm15, %vm3414_vm8 }
 0x175   : > { %v1347_v7 = vsel %vm1331_vm6, %v3125_v43, 0.0  ;;  %vm1399_vm12 = vmxor %vm1331_vm6, %vm1988_vm5 }
 0x176   : > { %v1614_v3 = vadd.f32 %v1598_v25, %v1498_v10  ;;  %v1367_v18 = vmul.f32 %v2215_v60, %v1347_v7  ;;  %vm1415_vm7 = vmand %vm3414_vm8, %vm1399_vm12  ;;  %vm3657_vm8 = vcmp.eq.f32.partialorder %v3213_v23, %v3271_v62 }
 0x177   : > { %vm1447_vm13 = vmand %vm3652_vm9, %vm1415_vm7  ;;  %vm3658_vm9 = vcmp.eq.f32.partialorder %v3249_v51, %v3271_v62 }
 0x178   : > { %v1637_v35 = vadd.f32 %v2373_v56, %v1614_v3  ;;  %v1383_v63 = vadd.f32 %v1367_v18, %v1283_v26  ;;  %v1463_v43 = vsel %vm1447_vm13, %v3160_v54, 0.0  ;;  %vm1515_vm15 = vmxor %vm1447_vm13, %vm1988_vm5 }
 0x179   : > { %v1483_v13 = vmul.f32 %v2227_v4, %v1463_v43  ;;  %vm1531_vm14 = vmand %vm1415_vm7, %vm1515_vm15  ;;  %vm3659_vm15 = vcmp.eq.f32.partialorder %v3216_v57, %v3323_v19  ;;  %v1285_v57 = vmul.f32 %v2213_v59, %v3352_v53 }
 0x17a   : > { %1653 = vst [vmem:[%s2440_s13 + $0x60] sm:$0xff] %v1637_v35  ;;  %vm1563_vm11 = vmand %vm3653_vm10, %vm1531_vm14  ;;  %vm3662_vm10 = vcmp.eq.f32.partialorder %v3253_v22, %v3323_v19 }
 0x17b   : > { %v1499_v12 = vadd.f32 %v1483_v13, %v1383_v63  ;;  %v1579_v29 = vsel %vm1563_vm11, %v3187_v8, 0.0  ;;  %vm3447_vm2 = vmxor %vm1248_vm4, %vm1988_vm5 }
 0x17c   : > { %v1599_v54 = vmul.f32 %v2229_v5, %v1579_v29  ;;  %vm1332_vm3 = vmand %vm3656_vm1, %vm3447_vm2 }
 0x17d   : > { %v1348_v45 = vsel %vm1332_vm3, %v3197_v32, 0.0  ;;  %vm1400_vm0 = vmxor %vm1332_vm3, %vm1988_vm5  ;;  %vm3663_vm3 = vcmp.eq.f32.partialorder %v3284_v21, %v3323_v19 }
 0x17e   : > { %v1615_v8 = vadd.f32 %v1599_v54, %v1499_v12  ;;  %v1368_v47 = vmul.f32 %v2215_v60, %v1348_v45  ;;  %vm1416_vm4 = vmand %vm3447_vm2, %vm1400_vm0 }
 0x17f   : > { %vm1448_vm6 = vmand %vm3657_vm8, %vm1416_vm4 }
 0x180   : > { %v1638_v2 = vadd.f32 %v2373_v56, %v1615_v8  ;;  %v1384_v14 = vadd.f32 %v1368_v47, %v1284_v39  ;;  %v1464_v32 = vsel %vm1448_vm6, %v3213_v23, 0.0  ;;  %vm1516_vm12 = vmxor %vm1448_vm6, %vm1988_vm5  ;;  %vm3664_vm6 = vcmp.eq.f32.partialorder %v3315_v49, %v3323_v19 }
 0x181   : > { %v1484_v46 = vmul.f32 %v2227_v4, %v1464_v32  ;;  %vm1532_vm7 = vmand %vm1416_vm4, %vm1516_vm12 }
 0x182   : > { %1654 = vst [vmem:[%s2440_s13 + $0x68] sm:$0xff] %v1638_v2  ;;  %vm1564_vm13 = vmand %vm3658_vm9, %vm1532_vm7 }
 0x183   : > { %v1500_v36 = vadd.f32 %v1484_v46, %v1384_v14  ;;  %v1580_v15 = vsel %vm1564_vm13, %v3249_v51, 0.0  ;;  %vm3480_vm14 = vmxor %vm3659_vm15, %vm1988_vm5 }
 0x184   : > { %v1600_v23 = vmul.f32 %v2229_v5, %v1580_v15  ;;  %vm1333_vm11 = vmand %vm3662_vm10, %vm3480_vm14 }
 0x185   : > { %v1349_v62 = vsel %vm1333_vm11, %v3253_v22, 0.0  ;;  %vm1401_vm2 = vmxor %vm1333_vm11, %vm1988_vm5  ;;  %v1906_v22 = vld [vmem:[%s3575_s5] ss:$0 sm:$0xff] }
 0x186   : > { %v1616_v51 = vadd.f32 %v1600_v23, %v1500_v36  ;;  %v1369_v37 = vmul.f32 %v2215_v60, %v1349_v62  ;;  %vm1417_vm1 = vmand %vm3480_vm14, %vm1401_vm2 }
 0x187   : > { %vm1449_vm0 = vmand %vm3663_vm3, %vm1417_vm1 }
 0x188   : > { %v1639_v41 = vadd.f32 %v1906_v22, %v1616_v51  ;;  %v1385_v55 = vadd.f32 %v1369_v37, %v1285_v57  ;;  %v1465_v59 = vsel %vm1449_vm0, %v3284_v21, 0.0  ;;  %vm1517_vm4 = vmxor %vm1449_vm0, %vm1988_vm5 }
 0x189   : > { %v1485_v60 = vmul.f32 %v2227_v4, %v1465_v59  ;;  %vm1533_vm8 = vmand %vm1417_vm1, %vm1517_vm4 }
 0x18a   : > { %1655 = vst [vmem:[%s2440_s13 + $0x70] sm:$0xff] %v1639_v41  ;;  %vm1565_vm12 = vmand %vm3664_vm6, %vm1533_vm8 }
 0x18b   : > { %v1501_v44 = vadd.f32 %v1485_v60, %v1385_v55  ;;  %v1581_v53 = vsel %vm1565_vm12, %v3315_v49, 0.0 }
 0x18c   : > { %v1601_v30 = vmul.f32 %v2229_v5, %v1581_v53 }
 0x18e   : > { %v1617_v21 = vadd.f32 %v1601_v30, %v1501_v44 }
 0x190   : > { %v1640_v4 = vadd.f32 %v1906_v22, %v1617_v21 }
 0x192   : > { %1656 = vst [vmem:[%s2440_s13 + $0x78] sm:$0xff] %v1640_v4 }
 0x193   : > { %1920 = shalt.err (!%p1917_p5)
}
 0x194   : > { %s1921_s7 = scalar_lea.hbm %s3517_s21, 2048  ;;  %s1925_s13 = scalar_lea.hbm %s3576_s6, 4096 }
 0x195   : > { %p1922_p6 = scmp.ne.s32.totalorder %s3517_s21, %s1921_s7  ;;  %p1926_p10 = scmp.lt.u32.totalorder %s3517_s21, %s3576_s6 }
 0x196   : > { %p1927_p11 = scmp.lt.u32.totalorder %s1925_s13, %s1921_s7  ;;  %p1929_p13 = scmp.lt.u32.totalorder %s1921_s7, %s3517_s21 }
 0x197   : > { %p1923_p7 = pnand %p1922_p6, %p2070_p4 }
 0x198   : > { %p1928_p12 = por %p1927_p11, %p1926_p10 }
 0x199   : > { %p1924_p9 = pneg %p1923_p7 }
 0x19a   : > { %p1930_p0 = por %p1929_p13, %p1928_p12 }
 0x19c   : > { %p1931_p1 = pnand %p1930_p0, %p1924_p9 }
 0x19e   : > { %1934 = shalt.err (!%p1931_p1)
}
 0x19f   : > { %s1990_s18 = smov 128   ;;  %s1991_s20 = smov 8  }
 0x1a0   : > { %1815 = dma.vmem_to_hbm [thread:$0]  (%p2070_p4), %s3519_s19, 2048, %s3517_s21, %s3524_s22, %s1990_s18, %s1990_s18, %s1991_s20  }
 0x1a1 PF: > { %p1821_p2 = scmp.ge.s32.totalorder %s1985_s28, 2  ;;  %s1686_s17 = sand.u32 1, %s1965_s23  }
 0x1a2   : > { %s1687_s0 = scalar_lea.sflag [#allocation5], %s1686_s17 }
 0x1a3   : > { %p1818_p3 = pnand %p1821_p2, %p2077_p8 }
 0x1a5   : > { %1960 = dma.done.wait (!%p1818_p3), %s1687_s0, 2048  }
 0x1a6   : > { %1962 = vsyncadd (!%p1818_p3), %s1687_s0, 4294965248  ;;  %s20_s28 = sadd.s32 1, %s1985_s28   ;;  %s3665_s23 = smov %s1969_s24 }
 0x1a7   : > { %p17_p5 = scmp.ge.s32.totalorder %s20_s28, 4   ;;  %s3666_s24 = smov %s1973_s25 }
 0x1a8   : > { %s3667_s25 = smov %s2083_s11  ;;  %s3668_s26 = smov %s1981_s27 }
 0x1a9   : > { %s3669_s27 = smov %s3671_s30  ;;  %19 = sbr.rel (!%p17_p5) target bundleno = 6 (0x6), region = 90 }
 0x1b0   :  { %1692 = vsyncpa [#allocation5], 1 }
 0x1b1   :  { %1694 = vsyncpa [#allocation5 + $0x1], 1 }

</bundles_post_ra>
